<compile_context>
chip_gen: v7x
topology: tpu7x:2x2x1
jax: 0.10.0
libtpu: 0.0.40
codegen_flags: <defaults>
</compile_context>

<pallas_src>
import functools

import jax
import jax.numpy as jnp
from jax.experimental import pallas as pl
from jax.experimental.pallas import tpu as pltpu

EPS = 1e-5


# ----------------------------- fused transformer kernel -----------------------------
def transformer_kernel(x_hbm, bn_ref, wq_ref, wk_ref, wv_ref, wo_ref, bo_ref,
                       w1_ref, b1_ref, w2_ref, b2_ref, o_ref,
                       state_ref, copy_sem,
                       *, heads, head_dim, bp_count, seq_len):
    layer = pl.program_id(0)

    # Layer 0: single DMA of the input activations HBM -> resident f32 state.
    # (x is NOT held as a pipelined VMEM block; it is read exactly once.)
    @pl.when(layer == 0)
    def _():
        cp = pltpu.make_async_copy(x_hbm, state_ref, copy_sem)
        cp.start()
        cp.wait()

    state = state_ref[...]                      # (R, D) f32 residual stream
    rows = state.shape[0]
    inner = heads * head_dim
    inv_r = 1.0 / rows

    def batchnorm(x, gamma, beta):
        # BatchNorm2d (training mode): per-channel stats over all (B,P,N) rows,
        # biased variance, eps=1e-5.  All f32 element-wise math.
        mean = jnp.sum(x, axis=0, keepdims=True) * inv_r
        xc = x - mean
        var = jnp.sum(xc * xc, axis=0, keepdims=True) * inv_r
        return xc * jax.lax.rsqrt(var + EPS) * gamma + beta

    # --------------------- PreNorm(BN1) -> Attention -> residual ---------------------
    xn = batchnorm(state, bn_ref[0:1, :], bn_ref[1:2, :])
    xn_b = xn.astype(jnp.bfloat16)              # bf16 MXU operands, f32 accumulate

    # q/k/v projections; softmax scale (head_dim**-0.5) is folded into wq host-side.
    q = jnp.dot(xn_b, wq_ref[...], preferred_element_type=jnp.float32)   # (R, inner)
    k = jnp.dot(xn_b, wk_ref[...], preferred_element_type=jnp.float32)
    v = jnp.dot(xn_b, wv_ref[...], preferred_element_type=jnp.float32)

    # Reshape-only split of the row dim into (sequence, position); the lane dim
    # is untouched, so these are layout no-ops (seq_len aligns with sublane tile).
    q3 = q.reshape(bp_count, seq_len, inner)
    k3 = k.reshape(bp_count, seq_len, inner)
    v3 = v.reshape(bp_count, seq_len, inner)

    head_outs = []
    for h in range(heads):                      # static, small (trace size O(heads))
        c0 = h * head_dim
        qh = q3[:, :, c0:c0 + head_dim].astype(jnp.bfloat16)     # (BP, N, hd)
        kh = k3[:, :, c0:c0 + head_dim].astype(jnp.bfloat16)
        vh = v3[:, :, c0:c0 + head_dim].astype(jnp.bfloat16)
        # scores, batched over BP sequences -> (BP, N, N)
        dots = jax.lax.dot_general(qh, kh, (((2,), (2,)), ((0,), (0,))),
                                   preferred_element_type=jnp.float32)
        dots = dots - jnp.max(dots, axis=-1, keepdims=True)       # f32 softmax
        e = jnp.exp(dots)
        p = e * pl.reciprocal(jnp.sum(e, axis=-1, keepdims=True), approx=True)
        oh = jax.lax.dot_general(p.astype(jnp.bfloat16), vh,
                                 (((2,), (1,)), ((0,), (0,))),
                                 preferred_element_type=jnp.float32)  # (BP, N, hd)
        head_outs.append(oh)

    heads_cat = jnp.concatenate(head_outs, axis=-1).reshape(rows, inner)
    attn_out = jnp.dot(heads_cat.astype(jnp.bfloat16), wo_ref[...],
                       preferred_element_type=jnp.float32) + bo_ref[...]
    state = state + attn_out                    # dropout(p=0) == identity

    # --------------------- PreNorm(BN2) -> FeedForward -> residual -------------------
    xn2 = batchnorm(state, bn_ref[2:3, :], bn_ref[3:4, :])
    h1 = jnp.dot(xn2.astype(jnp.bfloat16), w1_ref[...],
                 preferred_element_type=jnp.float32) + b1_ref[...]
    h1 = h1 * (1.0 / (1.0 + jnp.exp(-h1)))      # SiLU, f32
    y = jnp.dot(h1.astype(jnp.bfloat16), w2_ref[...],
                preferred_element_type=jnp.float32) + b2_ref[...]
    state = state + y

    state_ref[...] = state                      # carry f32 residual to next layer

    # Single HBM write of the result, on the last layer only.
    @pl.when(layer == pl.num_programs(0) - 1)
    def _():
        o_ref[...] = state.astype(o_ref.dtype)


# --------------------------------------- wrapper -------------------------------------
def transformer_forward(x, stacked, heads, head_dim):
    B, P, N, D = x.shape
    R = B * P * N
    depth = stacked["wq"].shape[0]
    inner = heads * head_dim
    M = stacked["w1"].shape[-1]
    x2 = x.reshape(R, D).astype(jnp.float32)

    kern = functools.partial(transformer_kernel, heads=heads, head_dim=head_dim,
                             bp_count=B * P, seq_len=N)

    # Advisory cost estimate for XLA's scheduler around the fused call.
    flops = 2 * depth * (3 * R * D * inner
                         + 2 * (B * P) * heads * N * N * head_dim
                         + R * inner * D
                         + 2 * R * D * M)
    transcendentals = depth * ((B * P) * heads * N * N + R * M)
    bytes_accessed = int(sum(int(v.size) * v.dtype.itemsize for v in stacked.values())
                         + 2 * R * D * 4)

    # Explicit VMEM budget: double-buffered per-layer bf16 weight set + resident f32
    # state + headroom for in-kernel temporaries (sized to fit v7x's 64 MiB VMEM).
    per_layer_weight_bytes = (3 * D * inner + inner * D + D * M + M * D) * 2 \
        + (4 * D + 3 * D + M) * 4
    temporaries = R * (D + 4 * inner + M + D) * 4 * 2
    vmem_limit = int(min(64 << 20,
                         max(32 << 20,
                             2 * per_layer_weight_bytes + R * D * 4
                             + temporaries + (8 << 20))))

    out = pl.pallas_call(
        kern,
        out_shape=jax.ShapeDtypeStruct((R, D), jnp.float32),
        grid=(depth,),
        in_specs=[
            pl.BlockSpec(memory_space=pl.ANY),                    # x stays in HBM
            pl.BlockSpec((None, 4, D), lambda l: (l, 0, 0)),      # [g1,b1,g2,b2] f32
            pl.BlockSpec((None, D, inner), lambda l: (l, 0, 0)),  # wq (bf16, scale folded)
            pl.BlockSpec((None, D, inner), lambda l: (l, 0, 0)),  # wk (bf16)
            pl.BlockSpec((None, D, inner), lambda l: (l, 0, 0)),  # wv (bf16)
            pl.BlockSpec((None, inner, D), lambda l: (l, 0, 0)),  # wo (bf16)
            pl.BlockSpec((None, 1, D), lambda l: (l, 0, 0)),      # bo (f32)
            pl.BlockSpec((None, D, M), lambda l: (l, 0, 0)),      # w1 (bf16)
            pl.BlockSpec((None, 1, M), lambda l: (l, 0, 0)),      # b1 (f32)
            pl.BlockSpec((None, M, D), lambda l: (l, 0, 0)),      # w2 (bf16)
            pl.BlockSpec((None, 1, D), lambda l: (l, 0, 0)),      # b2 (f32)
        ],
        out_specs=pl.BlockSpec((R, D), lambda l: (0, 0)),         # written on last layer
        scratch_shapes=[
            pltpu.VMEM((R, D), jnp.float32),                      # resident f32 residual
            pltpu.SemaphoreType.DMA,                              # layer-0 input DMA
        ],
        compiler_params=pltpu.CompilerParams(
            dimension_semantics=("arbitrary",),                   # layers are sequential
            vmem_limit_bytes=vmem_limit),
        cost_estimate=pl.CostEstimate(flops=int(flops),
                                      transcendentals=int(transcendentals),
                                      bytes_accessed=bytes_accessed),
    )(x2, stacked["bn"], stacked["wq"], stacked["wk"], stacked["wv"],
      stacked["wo"], stacked["bo"], stacked["w1"], stacked["b1"],
      stacked["w2"], stacked["b2"])
    return out.reshape(B, P, N, D).astype(x.dtype)


# ----------------------------------- param handling ----------------------------------
def linear_init(key, fan_in, fan_out, bias=True):
    bound = 1.0 / (fan_in ** 0.5)
    kw, kb = jax.random.split(key)
    w = jax.random.uniform(kw, (fan_in, fan_out), jnp.float32, -bound, bound)
    b = jax.random.uniform(kb, (fan_out,), jnp.float32, -bound, bound) if bias else None
    return w, b


def init_params(key, dim, depth, heads, head_dim, mlp_dim):
    inner = heads * head_dim
    project_out = not (heads == 1 and head_dim == dim)
    params = []
    for _ in range(depth):
        key, k1, k2, k3, k4 = jax.random.split(key, 5)
        wqkv, _ = linear_init(k1, dim, inner * 3, bias=False)
        if project_out:
            wo, bo = linear_init(k2, inner, dim, bias=True)
        else:  # to_out = Identity()
            wo = jnp.eye(inner, dim, dtype=jnp.float32)
            bo = jnp.zeros((dim,), jnp.float32)
        w1, b1 = linear_init(k3, dim, mlp_dim, bias=True)
        w2, b2 = linear_init(k4, mlp_dim, dim, bias=True)
        params.append(dict(
            bn1_g=jnp.ones((dim,), jnp.float32), bn1_b=jnp.zeros((dim,), jnp.float32),
            bn2_g=jnp.ones((dim,), jnp.float32), bn2_b=jnp.zeros((dim,), jnp.float32),
            wqkv=wqkv, wo=wo, bo=bo, w1=w1, b1=b1, w2=w2, b2=b2))
    return params


def stack_layer_params(params, heads, head_dim):
    """Stack per-layer params along a leading 'layer' axis for the fused kernel.

    wqkv is split into separate q/k/v weights (head-major columns, so the kernel
    needs only contiguous per-head lane slices), the softmax scale is folded into
    the q projection, and all big matmul weights are stored in bf16.
    """
    inner = heads * head_dim
    scale = head_dim ** (-0.5)
    bn = jnp.stack(
        [jnp.stack([lp["bn1_g"], lp["bn1_b"], lp["bn2_g"], lp["bn2_b"]], axis=0)
         for lp in params], axis=0)                                  # (depth, 4, D) f32
    wq = jnp.stack([lp["wqkv"][:, :inner] * scale for lp in params], 0)
    wk = jnp.stack([lp["wqkv"][:, inner:2 * inner] for lp in params], 0)
    wv = jnp.stack([lp["wqkv"][:, 2 * inner:] for lp in params], 0)
    return dict(
        bn=bn,
        wq=wq.astype(jnp.bfloat16),
        wk=wk.astype(jnp.bfloat16),
        wv=wv.astype(jnp.bfloat16),
        wo=jnp.stack([lp["wo"] for lp in params], 0).astype(jnp.bfloat16),
        bo=jnp.stack([lp["bo"].reshape(1, -1) for lp in params], 0),
        w1=jnp.stack([lp["w1"] for lp in params], 0).astype(jnp.bfloat16),
        b1=jnp.stack([lp["b1"].reshape(1, -1) for lp in params], 0),
        w2=jnp.stack([lp["w2"] for lp in params], 0).astype(jnp.bfloat16),
        b2=jnp.stack([lp["b2"].reshape(1, -1) for lp in params], 0))


# ------------------------------------ JAX reference ----------------------------------
def ref_bn(x, g, b):
    mean = jnp.mean(x, axis=(0, 1, 2), keepdims=True)
    var = jnp.mean((x - mean) ** 2, axis=(0, 1, 2), keepdims=True)
    return (x - mean) * jax.lax.rsqrt(var + EPS) * g + b


def ref_attn(xn, wqkv, wo, bo, heads, head_dim):
    B, P, N, D = xn.shape
    inner = heads * head_dim
    qkv = xn @ wqkv
    q, k, v = jnp.split(qkv, 3, axis=-1)
    sp = lambda t: t.reshape(B, P, N, heads, head_dim).transpose(0, 1, 3, 2, 4)
    q, k, v = sp(q), sp(k), sp(v)
    dots = jnp.einsum('bphnd,bphmd->bphnm', q, k) * (head_dim ** -0.5)
    attn = jax.nn.softmax(dots, axis=-1)
    out = jnp.einsum('bphnm,bphmd->bphnd', attn, v)
    out = out.transpose(0, 1, 3, 2, 4).reshape(B, P, N, inner)
    return out @ wo + bo


def ref_ffn(xn, w1, b1, w2, b2):
    h = xn @ w1 + b1
    h = h * jax.nn.sigmoid(h)
    return h @ w2 + b2


def ref_forward(x, params, heads, head_dim):
    out = x
    for lp in params:
        out = out + ref_attn(ref_bn(out, lp["bn1_g"], lp["bn1_b"]),
                             lp["wqkv"], lp["wo"], lp["bo"], heads, head_dim)
        out = out + ref_ffn(ref_bn(out, lp["bn2_g"], lp["bn2_b"]),
                            lp["w1"], lp["b1"], lp["w2"], lp["b2"])
    return out


# -------------------------------------------- main ------------------------------------
if __name__ == "__main__":
    B, P, N = 2, 2, 8
    dim, depth, heads, head_dim, mlp_dim = 32, 2, 2, 16, 64

    key = jax.random.PRNGKey(0)
    kx, kp = jax.random.split(key)
    x = jax.random.normal(kx, (B, P, N, dim), jnp.float32)
    params = init_params(kp, dim, depth, heads, head_dim, mlp_dim)
    stacked = stack_layer_params(params, heads, head_dim)

    out = transformer_forward(x, stacked, heads, head_dim)
    out = jax.block_until_ready(out)

    ref = ref_forward(x, params, heads, head_dim)
    assert out.shape == (B, P, N, dim)
    # Tolerance: the kernel uses bf16 weights/activations at the MXU (f32
    # accumulation) and the EUP approximate reciprocal in the softmax
    # denominator; the reference is pure f32.
    assert jnp.allclose(out, ref, atol=5e-2, rtol=5e-2), "mismatch vs reference"

    print("KERNEL_OK")
</pallas_src>

<mosaic_0001>
module attributes {stable_mosaic.version = 11 : i64} {
  func.func @transformer_kernel(%arg0: i32, %arg1: memref<32x32xf32, #tpu.memory_space<any>>, %arg2: memref<1x4x32xf32, #tpu.memory_space<vmem>>, %arg3: memref<1x32x32xbf16, #tpu.memory_space<vmem>>, %arg4: memref<1x32x32xbf16, #tpu.memory_space<vmem>>, %arg5: memref<1x32x32xbf16, #tpu.memory_space<vmem>>, %arg6: memref<1x32x32xbf16, #tpu.memory_space<vmem>>, %arg7: memref<1x1x32xf32, #tpu.memory_space<vmem>>, %arg8: memref<1x32x64xbf16, #tpu.memory_space<vmem>>, %arg9: memref<1x1x64xf32, #tpu.memory_space<vmem>>, %arg10: memref<1x64x32xbf16, #tpu.memory_space<vmem>>, %arg11: memref<1x1x32xf32, #tpu.memory_space<vmem>>, %arg12: memref<32x32xf32, #tpu.memory_space<vmem>>, %arg13: memref<32x32xf32, #tpu.memory_space<vmem>>, %arg14: memref<!tpu.dma_semaphore, #tpu.memory_space<semaphore_mem>>) attributes {dimension_semantics = [#tpu.dimension_semantics<arbitrary>], iteration_bounds = array<i64: 2>, scalar_prefetch = 0 : i64, scratch_operands = 2 : i64, tpu.core_type = #tpu.core_type<tc>, window_params = [{}, {transform_indices = @transform_1, window_bounds = array<i64: 1, 4, 32>}, {transform_indices = @transform_2, window_bounds = array<i64: 1, 32, 32>}, {transform_indices = @transform_3, window_bounds = array<i64: 1, 32, 32>}, {transform_indices = @transform_4, window_bounds = array<i64: 1, 32, 32>}, {transform_indices = @transform_5, window_bounds = array<i64: 1, 32, 32>}, {transform_indices = @transform_6, window_bounds = array<i64: 1, 1, 32>}, {transform_indices = @transform_7, window_bounds = array<i64: 1, 32, 64>}, {transform_indices = @transform_8, window_bounds = array<i64: 1, 1, 64>}, {transform_indices = @transform_9, window_bounds = array<i64: 1, 64, 32>}, {transform_indices = @transform_10, window_bounds = array<i64: 1, 1, 32>}, {pipeline_mode = #tpu.pipeline_mode<synchronous>, transform_indices = @transform_11, window_bounds = array<i64: 32, 32>}]} {
    %c0_i32 = arith.constant 0 : i32
    %0 = arith.cmpi eq, %arg0, %c0_i32 : i32
    %1 = arith.extui %0 : i1 to i32
    %c0_i32_0 = arith.constant 0 : i32
    %2 = arith.cmpi ne, %1, %c0_i32_0 : i32
    scf.if %2 {
      tpu.enqueue_dma source(%arg1 : memref<32x32xf32, #tpu.memory_space<any>>) target(%arg13 : memref<32x32xf32, #tpu.memory_space<vmem>>) target_semaphore(%arg14 : memref<!tpu.dma_semaphore, #tpu.memory_space<semaphore_mem>>)
      tpu.wait_dma2 semaphore(%arg14 : memref<!tpu.dma_semaphore, #tpu.memory_space<semaphore_mem>>) src(%arg1 : memref<32x32xf32, #tpu.memory_space<any>>) dst(%arg13 : memref<32x32xf32, #tpu.memory_space<vmem>>)
    } else {
    }
    %c0 = arith.constant 0 : index
    %c0_1 = arith.constant 0 : index
    %3 = vector.load %arg13[%c0, %c0_1] : memref<32x32xf32, #tpu.memory_space<vmem>>, vector<32x32xf32>
    %c0_2 = arith.constant 0 : index
    %c0_3 = arith.constant 0 : index
    %c0_4 = arith.constant 0 : index
    %4 = vector.load %arg2[%c0_2, %c0_3, %c0_4] : memref<1x4x32xf32, #tpu.memory_space<vmem>>, vector<1x1x32xf32>
    %5 = vector.shape_cast %4 : vector<1x1x32xf32> to vector<1x32xf32>
    %c0_5 = arith.constant 0 : index
    %c1 = arith.constant 1 : index
    %c0_6 = arith.constant 0 : index
    %6 = vector.load %arg2[%c0_5, %c1, %c0_6] : memref<1x4x32xf32, #tpu.memory_space<vmem>>, vector<1x1x32xf32>
    %7 = vector.shape_cast %6 : vector<1x1x32xf32> to vector<1x32xf32>
    %cst = arith.constant dense<0.000000e+00> : vector<32xf32>
    %8 = vector.multi_reduction <add>, %3, %cst [0] : vector<32x32xf32> to vector<32xf32>
    %9 = vector.shape_cast %8 : vector<32xf32> to vector<1x32xf32>
    %cst_7 = arith.constant 3.125000e-02 : f32
    %10 = vector.broadcast %cst_7 : f32 to vector<1x32xf32>
    %11 = arith.mulf %9, %10 : vector<1x32xf32>
    %12 = vector.broadcast %11 : vector<1x32xf32> to vector<32x32xf32>
    %13 = arith.subf %3, %12 : vector<32x32xf32>
    %14 = arith.mulf %13, %13 : vector<32x32xf32>
    %cst_8 = arith.constant dense<0.000000e+00> : vector<32xf32>
    %15 = vector.multi_reduction <add>, %14, %cst_8 [0] : vector<32x32xf32> to vector<32xf32>
    %16 = vector.shape_cast %15 : vector<32xf32> to vector<1x32xf32>
    %cst_9 = arith.constant 3.125000e-02 : f32
    %17 = vector.broadcast %cst_9 : f32 to vector<1x32xf32>
    %18 = arith.mulf %16, %17 : vector<1x32xf32>
    %cst_10 = arith.constant 9.99999974E-6 : f32
    %19 = vector.broadcast %cst_10 : f32 to vector<1x32xf32>
    %20 = arith.addf %18, %19 : vector<1x32xf32>
    %21 = math.rsqrt %20 : vector<1x32xf32>
    %22 = vector.broadcast %21 : vector<1x32xf32> to vector<32x32xf32>
    %23 = arith.mulf %13, %22 : vector<32x32xf32>
    %24 = vector.broadcast %5 : vector<1x32xf32> to vector<32x32xf32>
    %25 = arith.mulf %23, %24 : vector<32x32xf32>
    %26 = vector.broadcast %7 : vector<1x32xf32> to vector<32x32xf32>
    %27 = arith.addf %25, %26 : vector<32x32xf32>
    %28 = arith.truncf %27 : vector<32x32xf32> to vector<32x32xbf16>
    %c0_11 = arith.constant 0 : index
    %c0_12 = arith.constant 0 : index
    %c0_13 = arith.constant 0 : index
    %29 = vector.load %arg3[%c0_11, %c0_12, %c0_13] : memref<1x32x32xbf16, #tpu.memory_space<vmem>>, vector<1x32x32xbf16>
    %30 = vector.shape_cast %29 : vector<1x32x32xbf16> to vector<32x32xbf16>
    %cst_14 = arith.constant dense<0.000000e+00> : vector<32x32xf32>
    %31 = tpu.matmul %28, %30, %cst_14 {dimension_numbers = #tpu.dot_dimension_numbers<[1], [0], [0], [1], [0, 0, 1, 1], [], []>} : vector<32x32xbf16>, vector<32x32xbf16>, vector<32x32xf32> -> vector<32x32xf32>
    %c0_15 = arith.constant 0 : index
    %c0_16 = arith.constant 0 : index
    %c0_17 = arith.constant 0 : index
    %32 = vector.load %arg4[%c0_15, %c0_16, %c0_17] : memref<1x32x32xbf16, #tpu.memory_space<vmem>>, vector<1x32x32xbf16>
    %33 = vector.shape_cast %32 : vector<1x32x32xbf16> to vector<32x32xbf16>
    %cst_18 = arith.constant dense<0.000000e+00> : vector<32x32xf32>
    %34 = tpu.matmul %28, %33, %cst_18 {dimension_numbers = #tpu.dot_dimension_numbers<[1], [0], [0], [1], [0, 0, 1, 1], [], []>} : vector<32x32xbf16>, vector<32x32xbf16>, vector<32x32xf32> -> vector<32x32xf32>
    %c0_19 = arith.constant 0 : index
    %c0_20 = arith.constant 0 : index
    %c0_21 = arith.constant 0 : index
    %35 = vector.load %arg5[%c0_19, %c0_20, %c0_21] : memref<1x32x32xbf16, #tpu.memory_space<vmem>>, vector<1x32x32xbf16>
    %36 = vector.shape_cast %35 : vector<1x32x32xbf16> to vector<32x32xbf16>
    %cst_22 = arith.constant dense<0.000000e+00> : vector<32x32xf32>
    %37 = tpu.matmul %28, %36, %cst_22 {dimension_numbers = #tpu.dot_dimension_numbers<[1], [0], [0], [1], [0, 0, 1, 1], [], []>} : vector<32x32xbf16>, vector<32x32xbf16>, vector<32x32xf32> -> vector<32x32xf32>
    %38 = vector.shape_cast %31 : vector<32x32xf32> to vector<4x8x32xf32>
    %39 = vector.shape_cast %34 : vector<32x32xf32> to vector<4x8x32xf32>
    %40 = vector.shape_cast %37 : vector<32x32xf32> to vector<4x8x32xf32>
    %41 = vector.extract_strided_slice %38 {offsets = [0, 0, 0], sizes = [4, 8, 16], strides = [1, 1, 1]} : vector<4x8x32xf32> to vector<4x8x16xf32>
    %42 = arith.truncf %41 : vector<4x8x16xf32> to vector<4x8x16xbf16>
    %43 = vector.extract_strided_slice %39 {offsets = [0, 0, 0], sizes = [4, 8, 16], strides = [1, 1, 1]} : vector<4x8x32xf32> to vector<4x8x16xf32>
    %44 = arith.truncf %43 : vector<4x8x16xf32> to vector<4x8x16xbf16>
    %45 = vector.extract_strided_slice %40 {offsets = [0, 0, 0], sizes = [4, 8, 16], strides = [1, 1, 1]} : vector<4x8x32xf32> to vector<4x8x16xf32>
    %46 = arith.truncf %45 : vector<4x8x16xf32> to vector<4x8x16xbf16>
    %cst_23 = arith.constant dense<0.000000e+00> : vector<4x8x8xf32>
    %47 = tpu.matmul %42, %44, %cst_23 {dimension_numbers = #tpu.dot_dimension_numbers<[2], [2], [1], [1], [0, 0, 0, 1, 1, 1], [0], [0]>} : vector<4x8x16xbf16>, vector<4x8x16xbf16>, vector<4x8x8xf32> -> vector<4x8x8xf32>
    %cst_24 = arith.constant dense<0xFF800000> : vector<4x8xf32>
    %48 = vector.multi_reduction <maximumf>, %47, %cst_24 [2] : vector<4x8x8xf32> to vector<4x8xf32>
    %49 = vector.shape_cast %48 : vector<4x8xf32> to vector<4x8x1xf32>
    %50 = vector.broadcast %49 : vector<4x8x1xf32> to vector<4x8x8xf32>
    %51 = arith.subf %47, %50 : vector<4x8x8xf32>
    %52 = math.exp %51 : vector<4x8x8xf32>
    %cst_25 = arith.constant dense<0.000000e+00> : vector<4x8xf32>
    %53 = vector.multi_reduction <add>, %52, %cst_25 [2] : vector<4x8x8xf32> to vector<4x8xf32>
    %54 = vector.shape_cast %53 : vector<4x8xf32> to vector<4x8x1xf32>
    %55 = tpu.reciprocal %54 {approx = true} : vector<4x8x1xf32> -> vector<4x8x1xf32>
    %56 = vector.broadcast %55 : vector<4x8x1xf32> to vector<4x8x8xf32>
    %57 = arith.mulf %52, %56 : vector<4x8x8xf32>
    %58 = arith.truncf %57 : vector<4x8x8xf32> to vector<4x8x8xbf16>
    %cst_26 = arith.constant dense<0.000000e+00> : vector<4x8x16xf32>
    %59 = tpu.matmul %58, %46, %cst_26 {dimension_numbers = #tpu.dot_dimension_numbers<[2], [1], [1], [2], [0, 0, 0, 1, 1, 2], [0], [0]>} : vector<4x8x8xbf16>, vector<4x8x16xbf16>, vector<4x8x16xf32> -> vector<4x8x16xf32>
    %60 = vector.extract_strided_slice %38 {offsets = [0, 0, 16], sizes = [4, 8, 16], strides = [1, 1, 1]} : vector<4x8x32xf32> to vector<4x8x16xf32>
    %61 = arith.truncf %60 : vector<4x8x16xf32> to vector<4x8x16xbf16>
    %62 = vector.extract_strided_slice %39 {offsets = [0, 0, 16], sizes = [4, 8, 16], strides = [1, 1, 1]} : vector<4x8x32xf32> to vector<4x8x16xf32>
    %63 = arith.truncf %62 : vector<4x8x16xf32> to vector<4x8x16xbf16>
    %64 = vector.extract_strided_slice %40 {offsets = [0, 0, 16], sizes = [4, 8, 16], strides = [1, 1, 1]} : vector<4x8x32xf32> to vector<4x8x16xf32>
    %65 = arith.truncf %64 : vector<4x8x16xf32> to vector<4x8x16xbf16>
    %cst_27 = arith.constant dense<0.000000e+00> : vector<4x8x8xf32>
    %66 = tpu.matmul %61, %63, %cst_27 {dimension_numbers = #tpu.dot_dimension_numbers<[2], [2], [1], [1], [0, 0, 0, 1, 1, 1], [0], [0]>} : vector<4x8x16xbf16>, vector<4x8x16xbf16>, vector<4x8x8xf32> -> vector<4x8x8xf32>
    %cst_28 = arith.constant dense<0xFF800000> : vector<4x8xf32>
    %67 = vector.multi_reduction <maximumf>, %66, %cst_28 [2] : vector<4x8x8xf32> to vector<4x8xf32>
    %68 = vector.shape_cast %67 : vector<4x8xf32> to vector<4x8x1xf32>
    %69 = vector.broadcast %68 : vector<4x8x1xf32> to vector<4x8x8xf32>
    %70 = arith.subf %66, %69 : vector<4x8x8xf32>
    %71 = math.exp %70 : vector<4x8x8xf32>
    %cst_29 = arith.constant dense<0.000000e+00> : vector<4x8xf32>
    %72 = vector.multi_reduction <add>, %71, %cst_29 [2] : vector<4x8x8xf32> to vector<4x8xf32>
    %73 = vector.shape_cast %72 : vector<4x8xf32> to vector<4x8x1xf32>
    %74 = tpu.reciprocal %73 {approx = true} : vector<4x8x1xf32> -> vector<4x8x1xf32>
    %75 = vector.broadcast %74 : vector<4x8x1xf32> to vector<4x8x8xf32>
    %76 = arith.mulf %71, %75 : vector<4x8x8xf32>
    %77 = arith.truncf %76 : vector<4x8x8xf32> to vector<4x8x8xbf16>
    %cst_30 = arith.constant dense<0.000000e+00> : vector<4x8x16xf32>
    %78 = tpu.matmul %77, %65, %cst_30 {dimension_numbers = #tpu.dot_dimension_numbers<[2], [1], [1], [2], [0, 0, 0, 1, 1, 2], [0], [0]>} : vector<4x8x8xbf16>, vector<4x8x16xbf16>, vector<4x8x16xf32> -> vector<4x8x16xf32>
    %79 = tpu.concatenate %59, %78 in 2 : vector<4x8x16xf32>, vector<4x8x16xf32> -> vector<4x8x32xf32>
    %80 = vector.shape_cast %79 : vector<4x8x32xf32> to vector<32x32xf32>
    %81 = arith.truncf %80 : vector<32x32xf32> to vector<32x32xbf16>
    %c0_31 = arith.constant 0 : index
    %c0_32 = arith.constant 0 : index
    %c0_33 = arith.constant 0 : index
    %82 = vector.load %arg6[%c0_31, %c0_32, %c0_33] : memref<1x32x32xbf16, #tpu.memory_space<vmem>>, vector<1x32x32xbf16>
    %83 = vector.shape_cast %82 : vector<1x32x32xbf16> to vector<32x32xbf16>
    %cst_34 = arith.constant dense<0.000000e+00> : vector<32x32xf32>
    %84 = tpu.matmul %81, %83, %cst_34 {dimension_numbers = #tpu.dot_dimension_numbers<[1], [0], [0], [1], [0, 0, 1, 1], [], []>} : vector<32x32xbf16>, vector<32x32xbf16>, vector<32x32xf32> -> vector<32x32xf32>
    %c0_35 = arith.constant 0 : index
    %c0_36 = arith.constant 0 : index
    %c0_37 = arith.constant 0 : index
    %85 = vector.load %arg7[%c0_35, %c0_36, %c0_37] : memref<1x1x32xf32, #tpu.memory_space<vmem>>, vector<1x1x32xf32>
    %86 = vector.shape_cast %85 : vector<1x1x32xf32> to vector<1x32xf32>
    %87 = vector.broadcast %86 : vector<1x32xf32> to vector<32x32xf32>
    %88 = arith.addf %84, %87 : vector<32x32xf32>
    %89 = arith.addf %3, %88 : vector<32x32xf32>
    %c0_38 = arith.constant 0 : index
    %c2 = arith.constant 2 : index
    %c0_39 = arith.constant 0 : index
    %90 = vector.load %arg2[%c0_38, %c2, %c0_39] : memref<1x4x32xf32, #tpu.memory_space<vmem>>, vector<1x1x32xf32>
    %91 = vector.shape_cast %90 : vector<1x1x32xf32> to vector<1x32xf32>
    %c0_40 = arith.constant 0 : index
    %c3 = arith.constant 3 : index
    %c0_41 = arith.constant 0 : index
    %92 = vector.load %arg2[%c0_40, %c3, %c0_41] : memref<1x4x32xf32, #tpu.memory_space<vmem>>, vector<1x1x32xf32>
    %93 = vector.shape_cast %92 : vector<1x1x32xf32> to vector<1x32xf32>
    %cst_42 = arith.constant dense<0.000000e+00> : vector<32xf32>
    %94 = vector.multi_reduction <add>, %89, %cst_42 [0] : vector<32x32xf32> to vector<32xf32>
    %95 = vector.shape_cast %94 : vector<32xf32> to vector<1x32xf32>
    %cst_43 = arith.constant 3.125000e-02 : f32
    %96 = vector.broadcast %cst_43 : f32 to vector<1x32xf32>
    %97 = arith.mulf %95, %96 : vector<1x32xf32>
    %98 = vector.broadcast %97 : vector<1x32xf32> to vector<32x32xf32>
    %99 = arith.subf %89, %98 : vector<32x32xf32>
    %100 = arith.mulf %99, %99 : vector<32x32xf32>
    %cst_44 = arith.constant dense<0.000000e+00> : vector<32xf32>
    %101 = vector.multi_reduction <add>, %100, %cst_44 [0] : vector<32x32xf32> to vector<32xf32>
    %102 = vector.shape_cast %101 : vector<32xf32> to vector<1x32xf32>
    %cst_45 = arith.constant 3.125000e-02 : f32
    %103 = vector.broadcast %cst_45 : f32 to vector<1x32xf32>
    %104 = arith.mulf %102, %103 : vector<1x32xf32>
    %cst_46 = arith.constant 9.99999974E-6 : f32
    %105 = vector.broadcast %cst_46 : f32 to vector<1x32xf32>
    %106 = arith.addf %104, %105 : vector<1x32xf32>
    %107 = math.rsqrt %106 : vector<1x32xf32>
    %108 = vector.broadcast %107 : vector<1x32xf32> to vector<32x32xf32>
    %109 = arith.mulf %99, %108 : vector<32x32xf32>
    %110 = vector.broadcast %91 : vector<1x32xf32> to vector<32x32xf32>
    %111 = arith.mulf %109, %110 : vector<32x32xf32>
    %112 = vector.broadcast %93 : vector<1x32xf32> to vector<32x32xf32>
    %113 = arith.addf %111, %112 : vector<32x32xf32>
    %114 = arith.truncf %113 : vector<32x32xf32> to vector<32x32xbf16>
    %c0_47 = arith.constant 0 : index
    %c0_48 = arith.constant 0 : index
    %c0_49 = arith.constant 0 : index
    %115 = vector.load %arg8[%c0_47, %c0_48, %c0_49] : memref<1x32x64xbf16, #tpu.memory_space<vmem>>, vector<1x32x64xbf16>
    %116 = vector.shape_cast %115 : vector<1x32x64xbf16> to vector<32x64xbf16>
    %cst_50 = arith.constant dense<0.000000e+00> : vector<32x64xf32>
    %117 = tpu.matmul %114, %116, %cst_50 {dimension_numbers = #tpu.dot_dimension_numbers<[1], [0], [0], [1], [0, 0, 1, 1], [], []>} : vector<32x32xbf16>, vector<32x64xbf16>, vector<32x64xf32> -> vector<32x64xf32>
    %c0_51 = arith.constant 0 : index
    %c0_52 = arith.constant 0 : index
    %c0_53 = arith.constant 0 : index
    %118 = vector.load %arg9[%c0_51, %c0_52, %c0_53] : memref<1x1x64xf32, #tpu.memory_space<vmem>>, vector<1x1x64xf32>
    %119 = vector.shape_cast %118 : vector<1x1x64xf32> to vector<1x64xf32>
    %120 = vector.broadcast %119 : vector<1x64xf32> to vector<32x64xf32>
    %121 = arith.addf %117, %120 : vector<32x64xf32>
    %cst_54 = arith.constant 0.000000e+00 : f32
    %122 = vector.broadcast %cst_54 : f32 to vector<32x64xf32>
    %123 = arith.subf %122, %121 : vector<32x64xf32>
    %124 = math.exp %123 : vector<32x64xf32>
    %cst_55 = arith.constant 1.000000e+00 : f32
    %125 = vector.broadcast %cst_55 : f32 to vector<32x64xf32>
    %126 = arith.addf %125, %124 : vector<32x64xf32>
    %cst_56 = arith.constant 1.000000e+00 : f32
    %127 = vector.broadcast %cst_56 : f32 to vector<32x64xf32>
    %128 = arith.divf %127, %126 : vector<32x64xf32>
    %129 = arith.mulf %121, %128 : vector<32x64xf32>
    %130 = arith.truncf %129 : vector<32x64xf32> to vector<32x64xbf16>
    %c0_57 = arith.constant 0 : index
    %c0_58 = arith.constant 0 : index
    %c0_59 = arith.constant 0 : index
    %131 = vector.load %arg10[%c0_57, %c0_58, %c0_59] : memref<1x64x32xbf16, #tpu.memory_space<vmem>>, vector<1x64x32xbf16>
    %132 = vector.shape_cast %131 : vector<1x64x32xbf16> to vector<64x32xbf16>
    %cst_60 = arith.constant dense<0.000000e+00> : vector<32x32xf32>
    %133 = tpu.matmul %130, %132, %cst_60 {dimension_numbers = #tpu.dot_dimension_numbers<[1], [0], [0], [1], [0, 0, 1, 1], [], []>} : vector<32x64xbf16>, vector<64x32xbf16>, vector<32x32xf32> -> vector<32x32xf32>
    %c0_61 = arith.constant 0 : index
    %c0_62 = arith.constant 0 : index
    %c0_63 = arith.constant 0 : index
    %134 = vector.load %arg11[%c0_61, %c0_62, %c0_63] : memref<1x1x32xf32, #tpu.memory_space<vmem>>, vector<1x1x32xf32>
    %135 = vector.shape_cast %134 : vector<1x1x32xf32> to vector<1x32xf32>
    %136 = vector.broadcast %135 : vector<1x32xf32> to vector<32x32xf32>
    %137 = arith.addf %133, %136 : vector<32x32xf32>
    %138 = arith.addf %89, %137 : vector<32x32xf32>
    %c0_64 = arith.constant 0 : index
    %c0_65 = arith.constant 0 : index
    %139 = vector.load %arg13[%c0_64, %c0_65] : memref<32x32xf32, #tpu.memory_space<vmem>>, vector<32x32xf32>
    tpu.vector_store %arg13[%c0_64, %c0_65], %138 {strides = array<i32>} : memref<32x32xf32, #tpu.memory_space<vmem>>, vector<32x32xf32>,
    %c1_i32 = arith.constant 1 : i32
    %140 = arith.cmpi eq, %arg0, %c1_i32 : i32
    %141 = arith.extui %140 : i1 to i32
    %c0_i32_66 = arith.constant 0 : i32
    %142 = arith.cmpi ne, %141, %c0_i32_66 : i32
    scf.if %142 {
      %c0_67 = arith.constant 0 : index
      %c0_68 = arith.constant 0 : index
      %143 = vector.load %arg12[%c0_67, %c0_68] : memref<32x32xf32, #tpu.memory_space<vmem>>, vector<32x32xf32>
      tpu.vector_store %arg12[%c0_67, %c0_68], %138 {strides = array<i32>} : memref<32x32xf32, #tpu.memory_space<vmem>>, vector<32x32xf32>,
    } else {
    }
    return
  }
  func.func @transform_1(%arg0: i32) -> (i32, i32, i32) {
    %c0_i32 = arith.constant 0 : i32
    %c0_i32_0 = arith.constant 0 : i32
    %c0_i32_1 = arith.constant 0 : i32
    return %arg0, %c0_i32, %c0_i32_0 : i32, i32, i32
  }
  func.func @transform_2(%arg0: i32) -> (i32, i32, i32) {
    %c0_i32 = arith.constant 0 : i32
    %c0_i32_0 = arith.constant 0 : i32
    %c0_i32_1 = arith.constant 0 : i32
    return %arg0, %c0_i32, %c0_i32_0 : i32, i32, i32
  }
  func.func @transform_3(%arg0: i32) -> (i32, i32, i32) {
    %c0_i32 = arith.constant 0 : i32
    %c0_i32_0 = arith.constant 0 : i32
    %c0_i32_1 = arith.constant 0 : i32
    return %arg0, %c0_i32, %c0_i32_0 : i32, i32, i32
  }
  func.func @transform_4(%arg0: i32) -> (i32, i32, i32) {
    %c0_i32 = arith.constant 0 : i32
    %c0_i32_0 = arith.constant 0 : i32
    %c0_i32_1 = arith.constant 0 : i32
    return %arg0, %c0_i32, %c0_i32_0 : i32, i32, i32
  }
  func.func @transform_5(%arg0: i32) -> (i32, i32, i32) {
    %c0_i32 = arith.constant 0 : i32
    %c0_i32_0 = arith.constant 0 : i32
    %c0_i32_1 = arith.constant 0 : i32
    return %arg0, %c0_i32, %c0_i32_0 : i32, i32, i32
  }
  func.func @transform_6(%arg0: i32) -> (i32, i32, i32) {
    %c0_i32 = arith.constant 0 : i32
    %c0_i32_0 = arith.constant 0 : i32
    %c0_i32_1 = arith.constant 0 : i32
    return %arg0, %c0_i32, %c0_i32_0 : i32, i32, i32
  }
  func.func @transform_7(%arg0: i32) -> (i32, i32, i32) {
    %c0_i32 = arith.constant 0 : i32
    %c0_i32_0 = arith.constant 0 : i32
    %c0_i32_1 = arith.constant 0 : i32
    return %arg0, %c0_i32, %c0_i32_0 : i32, i32, i32
  }
  func.func @transform_8(%arg0: i32) -> (i32, i32, i32) {
    %c0_i32 = arith.constant 0 : i32
    %c0_i32_0 = arith.constant 0 : i32
    %c0_i32_1 = arith.constant 0 : i32
    return %arg0, %c0_i32, %c0_i32_0 : i32, i32, i32
  }
  func.func @transform_9(%arg0: i32) -> (i32, i32, i32) {
    %c0_i32 = arith.constant 0 : i32
    %c0_i32_0 = arith.constant 0 : i32
    %c0_i32_1 = arith.constant 0 : i32
    return %arg0, %c0_i32, %c0_i32_0 : i32, i32, i32
  }
  func.func @transform_10(%arg0: i32) -> (i32, i32, i32) {
    %c0_i32 = arith.constant 0 : i32
    %c0_i32_0 = arith.constant 0 : i32
    %c0_i32_1 = arith.constant 0 : i32
    return %arg0, %c0_i32, %c0_i32_0 : i32, i32, i32
  }
  func.func @transform_11(%arg0: i32) -> (i32, i32) {
    %c0_i32 = arith.constant 0 : i32
    %c0_i32_0 = arith.constant 0 : i32
    %c0_i32_1 = arith.constant 0 : i32
    return %c0_i32, %c0_i32_0 : i32, i32
  }
}

</mosaic_0001>

<bundles_post_ra>
// kernel: tpu_custom_call.1
= control target key start
LH: loop header
LB: loop body
LE: loop exit
PB: predicated region body
PF: predicated region fallthrough
CT: control target
= control target key end

     0   :  { %s3761_s0 = inlined_call_operand.vmem [shape: f32[32,32], index: 0, kind: input, shape index: {}]   ;;  %s3762_s1 = inlined_call_operand.hbm [shape: f32[2,4,32], index: 1, kind: input, shape index: {}]   ;;  %s3763_s2 = inlined_call_operand.vmem [shape: bf16[2,32,32], index: 2, kind: input, shape index: {}]   ;;  %s3764_s3 = inlined_call_operand.vmem [shape: bf16[2,32,32], index: 3, kind: input, shape index: {}]   ;;  %s3765_s4 = inlined_call_operand.hbm [shape: bf16[2,32,32], index: 4, kind: input, shape index: {}]   ;;  %s3766_s5 = inlined_call_operand.hbm [shape: bf16[2,32,32], index: 5, kind: input, shape index: {}]   ;;  %s3767_s6 = inlined_call_operand.vmem [shape: f32[2,1,32], index: 6, kind: input, shape index: {}]   ;;  %s3768_s7 = inlined_call_operand.hbm [shape: bf16[2,32,64], index: 7, kind: input, shape index: {}]   ;;  %s3769_s8 = inlined_call_operand.hbm [shape: f32[2,1,64], index: 8, kind: input, shape index: {}]   ;;  %s3770_s9 = inlined_call_operand.vmem [shape: bf16[2,64,32], index: 9, kind: input, shape index: {}]   ;;  %s3771_s10 = inlined_call_operand.vmem [shape: f32[2,1,32], index: 10, kind: input, shape index: {}]   ;;  %s3772_s11 = inlined_call_operand.hbm [shape: f32[32,32], index: 11, kind: output, shape index: {}]  }
   0x1   :  { %3787 = sst [smem:[#allocation23_spill]] %s3761_s0 }
   0x2   :  { %3788 = sst [smem:[#allocation24_spill]] %s3764_s3 }
   0x3   :  { %3789 = sst [smem:[#allocation25_spill]] %s3765_s4 }
   0x4   :  { %3790 = sst [smem:[#allocation26_spill]] %s3768_s7 }
   0x5   :  { %3791 = sst [smem:[#allocation27_spill]] %s3770_s9 }
   0x6   :  { %3792 = sst [smem:[#allocation28_spill]] %s3771_s10 }
   0x7   :  { %3793 = sst [smem:[#allocation29_spill]] %s3772_s11 }
   0x8   :  { %16 = vsyncpa [#allocation5], 0 }
   0x9   :  { %18 = vsyncpa [#allocation5 + $0x1], 0 }
   0xa   :  { %19 = vsyncpa [#allocation8], 0 }
   0xb   :  { %21 = vsyncpa [#allocation8 + $0x1], 0 }
   0xc   :  { %22 = vsyncpa [#allocation11], 0 }
   0xd   :  { %24 = vsyncpa [#allocation11 + $0x1], 0 }
   0xe   :  { %25 = vsyncpa [#allocation6], 0  ;;  %s3146_s17 = smov 0   ;;  %s3148_s18 = smov 0  }
   0xf   :  { %s3150_s19 = smov 0   ;;  %s3152_s20 = smov 0  }
  0x10 LB: > { %3794 = sst [smem:[#allocation20_spill]] %s3066_s19  ;;  %s3165_s21 = sadd.s32 4294967295, %s3070_s20   ;;  %s3070_s20 = sphi %s3152_s20, %s3823_s20   ;;  %s3066_s19 = sphi %s3150_s19, %s3825_s19   ;;  %s3062_s18 = sphi %s3148_s18, %s3827_s18   ;;  %s3058_s17 = sphi %s3146_s17, %s3826_s17  }
  0x11   : > { %s3168_s22 = sadd.s32 1, %s3070_s20   ;;  %s38_s24 = sadd.s32 1, %s3066_s19 }
  0x12   : > { %3795 = sst [smem:[#allocation21_spill]] %s3168_s22  ;;  %s35_s23 = ssub.s32 %s3070_s20, %s3168_s22 }
  0x13   : > { %p36_p0 = scmp.eq.s32.totalorder %s35_s23, 0  ;;  %p45_p1 = scmp.ne.s32.totalorder %s3066_s19, %s3062_s18 }
  0x14   : > { %p46_p2 = scmp.eq.s32.totalorder %s3070_s20, 0  ;;  %p51_p3 = scmp.ne.s32.totalorder %s3062_s18, %s3058_s17 }
  0x15   : > { %s3178_s25 = scalar_select %p36_p0, %s3066_s19, %s38_s24  }
  0x16   : > { %p47_p4 = por %p46_p2, %p45_p1  ;;  %p52_p5 = scmp.eq.s32.totalorder %s3165_s21, 0 }
  0x17   : > { %3796 = sst [smem:[#allocation22_spill]] %s3178_s25  ;;  %p2726_p6 = scmp.lt.s32.totalorder %s3070_s20, 2 }
  0x18   : > { %p3182_p7 = por %p52_p5, %p51_p3  ;;  %s3187_s27 = sand.u32 1, %s3066_s19  }
  0x19   : > { %p3189_p8 = pnand %p2726_p6, %p47_p4  ;;  %s3776_s29 = sand.u32 1, %s3070_s20  }
  0x1a   : > { %s3797_s26 = scalar_select %p3182_p7, 1, 0 }
  0x1b   : > { %s3798_s28 = scalar_select %p3189_p8, 1, 0 }
  0x1c   : > { %s3195_s30 = sshll.u32 %s3187_s27, 4  ;;  %s3198_s12 = sshll.u32 %s3070_s20, 8 }
  0x1d   : > { %s368_s13 = scalar_lea.vmem [#allocation7], %s3195_s30  ;;  %s3799_s4 = sld [smem:[#allocation25_spill]] }
  0x1e   : > { %s375_s14 = sshll.u32 %s368_s13, 4  ;;  %s3211_s23 = scalar_lea.sflag [#allocation8], %s3776_s29  ;;  %s3207_s14 = int_to_ptr.vmem [resolvable:$true] %s375_s14 }
  0x1f   : > { %p3217_p10 = pneg %p3189_p8 }
  0x23   : > { %s3205_s17 = scalar_lea.hbm %s3799_s4, %s3198_s12  ;;  %s2851_s16 = scalar_lea.hbm %s3799_s4, 512 }
  0x24   : > { %s2846_s24 = scalar_lea.hbm %s3205_s17, 256  ;;  %p2852_p13 = scmp.lt.u32.totalorder %s3205_s17, %s3799_s4 }
  0x25   : > { %p2847_p9 = scmp.ne.s32.totalorder %s3205_s17, %s2846_s24  ;;  %p2853_p0 = scmp.lt.u32.totalorder %s2851_s16, %s2846_s24 }
  0x26   : > { %p2855_p2 = scmp.lt.u32.totalorder %s2846_s24, %s3205_s17 }
  0x27   : > { %p2849_p11 = pnand %p3217_p10, %p2847_p9  ;;  %p2854_p1 = por %p2853_p0, %p2852_p13 }
  0x29   : > { %p2850_p12 = pneg %p2849_p11  ;;  %p2856_p3 = por %p2855_p2, %p2854_p1 }
  0x2b   : > { %p2857_p4 = pnand %p2856_p3, %p2850_p12 }
  0x2d   : > { %2860 = shalt.err (!%p2857_p4)
}
  0x2e   : > { %s2861_s29 = scalar_lea.vmem %s3207_s14, 256  ;;  %s3072_s13 = smov [#allocation7]  }
  0x2f   : > { %p2862_p5 = scmp.ne.s32.totalorder %s3207_s14, %s2861_s29  ;;  %s2866_s15 = sshll.u32 %s3072_s13, 4  ;;  %s2867_s15 = int_to_ptr.vmem [resolvable:$false] %s2866_s15 }
  0x30   : > { %s2868_s19 = scalar_lea.vmem %s2867_s15, 512  ;;  %p2869_p11 = scmp.lt.s32.totalorder %s3207_s14, %s2867_s15 }
  0x31   : > { %p2864_p6 = pnand %p2862_p5, %p3217_p10  ;;  %p2870_p7 = scmp.lt.s32.totalorder %s2868_s19, %s2861_s29 }
  0x33   : > { %p2865_p9 = pneg %p2864_p6  ;;  %p2871_p13 = por %p2870_p7, %p2869_p11 }
  0x35   : > { %p2872_p0 = pnand %p2871_p13, %p2865_p9 }
  0x37   : > { %2875 = shalt.err (!%p2872_p0)
}
  0x38   : > { %s3778_s22 = smov 64   ;;  %s3780_s24 = smov 4  }
  0x39   : > { %2716 = dma.hbm_to_vmem [thread:$0]  (!%p3189_p8), %s3205_s17, 256, %s3207_s14, %s3211_s23, %s3778_s22, %s3778_s22, %s3780_s24  }
  0x3a   : > { %p2417_p7 = scmp.ge.s32.totalorder %s3070_s20, 1  ;;  %p462_p12 = scmp.lt.s32.totalorder %s3070_s20, 3 }
  0x3b   : > { %s3802_s7 = sld [smem:[#allocation26_spill]]  ;;  %s416_s19 = scalar_lea.vmem [#allocation10], %s3195_s30 }
  0x3c   : > { %p3246_p1 = pnand %p2417_p7, %p462_p12  ;;  %s423_s4 = sshll.u32 %s416_s19, 4  ;;  %s3257_s4 = int_to_ptr.vmem [resolvable:$true] %s423_s4 }
  0x3d   : > { %s2405_s14 = sshll.u32 %s3187_s27, 2  ;;  %s3803_s17 = sand.u32 1, %s3070_s20  }
  0x3e   : > { %s3801_s29 = scalar_select %p3246_p1, 1, 0 }
  0x3f   : > { %s3262_s22 = scalar_lea.sflag [#allocation11], %s3803_s17 }
  0x41   : > { %s3254_s15 = scalar_lea.hbm %s3802_s7, %s3198_s12  ;;  %s2881_s11 = scalar_lea.hbm %s3802_s7, 512 }
  0x42   : > { %s2876_s24 = scalar_lea.hbm %s3254_s15, 256  ;;  %p2882_p5 = scmp.lt.u32.totalorder %s3254_s15, %s3802_s7 }
  0x43   : > { %p2877_p2 = scmp.ne.s32.totalorder %s3254_s15, %s2876_s24  ;;  %p2883_p6 = scmp.lt.u32.totalorder %s2881_s11, %s2876_s24 }
  0x44   : > { %p2885_p11 = scmp.lt.u32.totalorder %s2876_s24, %s3254_s15 }
  0x45   : > { %p2879_p3 = pnand %p2877_p2, %p3217_p10  ;;  %p2884_p9 = por %p2883_p6, %p2882_p5 }
  0x47   : > { %p2880_p4 = pneg %p2879_p3  ;;  %p2886_p13 = por %p2885_p11, %p2884_p9 }
  0x49   : > { %p2887_p0 = pnand %p2886_p13, %p2880_p4 }
  0x4b   : > { %2890 = shalt.err (!%p2887_p0)
}
  0x4c   : > { %s2891_s19 = scalar_lea.vmem %s3257_s4, 256  ;;  %s3075_s17 = smov [#allocation10]  }
  0x4d   : > { %p2892_p7 = scmp.ne.s32.totalorder %s3257_s4, %s2891_s19  ;;  %s2896_s16 = sshll.u32 %s3075_s17, 4  ;;  %s2897_s16 = int_to_ptr.vmem [resolvable:$false] %s2896_s16 }
  0x4e   : > { %s2898_s0 = scalar_lea.vmem %s2897_s16, 512  ;;  %p2899_p3 = scmp.lt.s32.totalorder %s3257_s4, %s2897_s16 }
  0x4f   : > { %p2894_p12 = pnand %p2892_p7, %p3217_p10  ;;  %p2900_p1 = scmp.lt.s32.totalorder %s2898_s0, %s2891_s19 }
  0x51   : > { %p2895_p2 = pneg %p2894_p12  ;;  %p2901_p5 = por %p2900_p1, %p2899_p3 }
  0x53   : > { %p2902_p6 = pnand %p2901_p5, %p2895_p2 }
  0x55   : > { %2905 = shalt.err (!%p2902_p6)
}
  0x56   : > { %s3804_s9 = smov 4   ;;  %s3805_s11 = smov 64  }
  0x57   : > { %2722 = dma.hbm_to_vmem [thread:$0]  (!%p3189_p8), %s3254_s15, 256, %s3257_s4, %s3262_s22, %s3805_s11, %s3805_s11, %s3804_s9  }
  0x58   : > { %s2406_s24 = sshll.u32 %s3070_s20, 6  ;;  %s334_s16 = scalar_lea.vmem [#allocation4], %s2405_s14 }
  0x59   : > { %s3293_s19 = scalar_lea.hbm %s3762_s1, %s2406_s24  ;;  %s341_s0 = sshll.u32 %s334_s16, 4  ;;  %s342_s0 = int_to_ptr.vmem [resolvable:$true] %s341_s0 }
  0x5a   : > { %s331_s7 = scalar_lea.sflag [#allocation5], %s3187_s27  ;;  %s2906_s10 = scalar_lea.hbm %s3293_s19, 64 }
  0x5b   : > { %p2907_p1 = scmp.ne.s32.totalorder %s3293_s19, %s2906_s10  ;;  %s2911_s13 = scalar_lea.hbm %s3762_s1, 128 }
  0x5c   : > { %p2912_p11 = scmp.lt.u32.totalorder %s3293_s19, %s3762_s1  ;;  %p2913_p13 = scmp.lt.u32.totalorder %s2911_s13, %s2906_s10 }
  0x5d   : > { %p2909_p4 = pnand %p2907_p1, %p3217_p10  ;;  %p2915_p7 = scmp.lt.u32.totalorder %s2906_s10, %s3293_s19 }
  0x5e   : > { %p2914_p0 = por %p2913_p13, %p2912_p11 }
  0x5f   : > { %p2910_p9 = pneg %p2909_p4 }
  0x60   : > { %p2916_p12 = por %p2915_p7, %p2914_p0 }
  0x62   : > { %p2917_p2 = pnand %p2916_p12, %p2910_p9 }
  0x64   : > { %2920 = shalt.err (!%p2917_p2)
}
  0x65   : > { %s2921_s14 = scalar_lea.vmem %s342_s0, 64  ;;  %s3076_s16 = smov [#allocation4]  }
  0x66   : > { %p2922_p3 = scmp.ne.s32.totalorder %s342_s0, %s2921_s14  ;;  %s2926_s3 = sshll.u32 %s3076_s16, 4  ;;  %s2927_s3 = int_to_ptr.vmem [resolvable:$false] %s2926_s3 }
  0x67   : > { %s2928_s4 = scalar_lea.vmem %s2927_s3, 128  ;;  %p2929_p1 = scmp.lt.s32.totalorder %s342_s0, %s2927_s3 }
  0x68   : > { %p2924_p5 = pnand %p2922_p3, %p3217_p10  ;;  %p2930_p4 = scmp.lt.s32.totalorder %s2928_s4, %s2921_s14 }
  0x6a   : > { %p2925_p6 = pneg %p2924_p5  ;;  %p2931_p8 = por %p2930_p4, %p2929_p1 }
  0x6c   : > { %p2932_p11 = pnand %p2931_p8, %p2925_p6 }
  0x6e   : > { %2935 = shalt.err (!%p2932_p11)
}
  0x6f   : > { %p3806_p13 = scmp.ne.s32.totalorder %s3798_s28, 0  ;;  %s3319_s13 = scalar_lea.hbm %s3766_s5, %s3198_s12 }
  0x70   : > { %s389_s3 = scalar_lea.vmem [#allocation9], %s3195_s30  ;;  %s2936_s17 = scalar_lea.hbm %s3319_s13, 256 }
  0x71   : > { %2713 = dma.hbm_to_vmem [thread:$0]  (!%p3806_p13), %s3293_s19, 64, %s342_s0, %s331_s7  }
  0x72   : > { %s396_s24 = sshll.u32 %s389_s3, 4  ;;  %p2937_p8 = scmp.ne.s32.totalorder %s3319_s13, %s2936_s17  ;;  %s3322_s24 = int_to_ptr.vmem [resolvable:$true] %s396_s24 }
  0x73   : > { %s2941_s19 = scalar_lea.hbm %s3766_s5, 512  ;;  %p2942_p7 = scmp.lt.u32.totalorder %s3319_s13, %s3766_s5 }
  0x74   : > { %p2939_p9 = pnand %p2937_p8, %p3217_p10  ;;  %p2943_p12 = scmp.lt.u32.totalorder %s2941_s19, %s2936_s17 }
  0x75   : > { %p2945_p3 = scmp.lt.u32.totalorder %s2936_s17, %s3319_s13 }
  0x76   : > { %p2940_p0 = pneg %p2939_p9  ;;  %p2944_p2 = por %p2943_p12, %p2942_p7 }
  0x78   : > { %p2946_p5 = por %p2945_p3, %p2944_p2 }
  0x7a   : > { %p2947_p6 = pnand %p2946_p5, %p2940_p0 }
  0x7c   : > { %2950 = shalt.err (!%p2947_p6)
}
  0x7d   : > { %s2951_s30 = scalar_lea.vmem %s3322_s24, 256  ;;  %s3077_s16 = smov [#allocation9]  }
  0x7e   : > { %p2952_p1 = scmp.ne.s32.totalorder %s3322_s24, %s2951_s30  ;;  %s2956_s4 = sshll.u32 %s3077_s16, 4  ;;  %s2957_s4 = int_to_ptr.vmem [resolvable:$false] %s2956_s4 }
  0x7f   : > { %s2958_s10 = scalar_lea.vmem %s2957_s4, 512  ;;  %p2959_p8 = scmp.lt.s32.totalorder %s3322_s24, %s2957_s4 }
  0x80   : > { %p2954_p4 = pnand %p2952_p1, %p3217_p10  ;;  %p2960_p9 = scmp.lt.s32.totalorder %s2958_s10, %s2951_s30 }
  0x82   : > { %p2955_p11 = pneg %p2954_p4  ;;  %p2961_p7 = por %p2960_p9, %p2959_p8 }
  0x84   : > { %p2962_p12 = pnand %p2961_p7, %p2955_p11 }
  0x86   : > { %2965 = shalt.err (!%p2962_p12)
}
  0x87   : > { %2719 = dma.hbm_to_vmem [thread:$0]  (!%p3806_p13), %s3319_s13, 256, %s3322_s24, %s3211_s23, %s3805_s11, %s3805_s11, %s3804_s9  }
  0x88   : > { %s2416_s15 = sshll.u32 %s3070_s20, 4  ;;  %s436_s3 = scalar_lea.vmem [#allocation12], %s3187_s27 }
  0x89   : > { %s443_s17 = sshll.u32 %s436_s3, 4  ;;  %s441_s19 = scalar_lea.hbm %s3769_s8, %s2416_s15  ;;  %s444_s17 = int_to_ptr.vmem [resolvable:$true] %s443_s17 }
  0x8a   : > { %s2966_s0 = scalar_lea.hbm %s441_s19, 16  ;;  %s2971_s16 = scalar_lea.hbm %s3769_s8, 32 }
  0x8b   : > { %p2967_p0 = scmp.ne.s32.totalorder %s441_s19, %s2966_s0  ;;  %p2972_p5 = scmp.lt.u32.totalorder %s441_s19, %s3769_s8 }
  0x8c   : > { %p2973_p6 = scmp.lt.u32.totalorder %s2971_s16, %s2966_s0  ;;  %p2975_p4 = scmp.lt.u32.totalorder %s2966_s0, %s441_s19 }
  0x8d   : > { %p2969_p2 = pnand %p2967_p0, %p3217_p10 }
  0x8e   : > { %p2974_p1 = por %p2973_p6, %p2972_p5 }
  0x8f   : > { %p2970_p3 = pneg %p2969_p2 }
  0x90   : > { %p2976_p11 = por %p2975_p4, %p2974_p1 }
  0x92   : > { %p2977_p8 = pnand %p2976_p11, %p2970_p3 }
  0x94   : > { %2980 = shalt.err (!%p2977_p8)
}
  0x95   : > { %s2981_s20 = scalar_lea.vmem %s444_s17, 16  ;;  %s3078_s27 = smov [#allocation12]  }
  0x96   : > { %p2982_p9 = scmp.ne.s32.totalorder %s444_s17, %s2981_s20  ;;  %s2986_s23 = sshll.u32 %s3078_s27, 4  ;;  %s2987_s23 = int_to_ptr.vmem [resolvable:$false] %s2986_s23 }
  0x97   : > { %s2988_s9 = scalar_lea.vmem %s2987_s23, 32  ;;  %p2989_p0 = scmp.lt.s32.totalorder %s444_s17, %s2987_s23 }
  0x98   : > { %p2984_p7 = pnand %p2982_p9, %p3217_p10  ;;  %p2990_p2 = scmp.lt.s32.totalorder %s2988_s9, %s2981_s20 }
  0x9a   : > { %p2985_p12 = pneg %p2984_p7  ;;  %p2991_p13 = por %p2990_p2, %p2989_p0 }
  0x9c   : > { %p2992_p5 = pnand %p2991_p13, %p2985_p12 }
  0x9e   : > { %2995 = shalt.err (!%p2992_p5)
}
  0x9f   : > { %p3807_p6 = scmp.ne.s32.totalorder %s3798_s28, 0  ;;  %p3808_p3 = scmp.ne.s32.totalorder %s3801_s29, 0 }
  0xa0   : > { %s3370_s25 = sand.u32 (!%p3808_p3), 1, %s3062_s18   ;;  %p3809_p10 = scmp.ne.s32.totalorder (!%p3808_p3), %s3797_s26, 0 }
  0xa1   : > { %2725 = dma.hbm_to_vmem [thread:$0]  (!%p3807_p6), %s441_s19, 16, %s444_s17, %s3262_s22  }
  0xa2   : > { %466 = sbr.rel (%p3808_p3) target bundleno = 2794 (0xaea), region = 60  ;;  %s2418_s11 = sshll.u32 (!%p3808_p3), %s3370_s25, 2 }
  0xa3   : > { %s469_s13 = scalar_lea.sflag (!%p3808_p3), [#allocation5], %s3370_s25  ;;  %s3374_s24 = scalar_lea.vmem (!%p3808_p3), [#allocation4], %s2418_s11 }
  0xa9   : > { %3039 = dma.done.wait (%p3809_p10), %s469_s13, 64  }
  0xaa   : > { %3041 = vsyncadd (%p3809_p10), %s469_s13, 4294967232  ;;  %s477_s28 = sand.u32 1, %s3165_s21   ;;  %s3382_s22 = sshll.u32 %s3370_s25, 4 }
  0xab   : > { %s478_s29 = scalar_lea.sflag [#allocation8], %s477_s28 }
  0xac   : > { %3043 = dma.done.wait (%p3809_p10), %s478_s29, 512  }
  0xad   : > { %3045 = vsyncadd (%p3809_p10), %s478_s29, 4294966784  ;;  %s496_s17 = scalar_lea.sflag [#allocation11], %s477_s28 }
  0xae   : > { %3047 = dma.done.wait (%p3809_p10), %s496_s17, 272  }
  0xaf   : > { %3049 = vsyncadd (%p3809_p10), %s496_s17, 4294967024  ;;  %p579_p13 = scmp.lt.s32.totalorder %s3165_s21, 1  ;;  %s3810_s27 = sld [smem:[#allocation24_spill]] }
  0xb0   : > { %s3811_s28 = sld [smem:[#allocation28_spill]]  ;;  %s3812_s3 = sld [smem:[#allocation27_spill]] }
  0xb1   : > { %s3397_s7 = scalar_select %p579_p13, %s3165_s21, 1 }
  0xb2   : > { %s507_s0 = scalar_lea.vmem [#allocation12], %s3370_s25  ;;  %p2428_p1 = scmp.ne.s32.totalorder %s3165_s21, 0 }
  0xb3   : > { %s2487_s19 = sshll.u32 %s3397_s7, 4  ;;  %s591_s30 = scalar_lea.vmem %s3767_s6, %s3397_s7 }
  0xb4   : > { %s3407_s26 = scalar_lea.vmem %s3763_s2, %s2487_s19  ;;  %s2489_s9 = sshll.u32 %s3397_s7, 5 }
  0xb5   : > { %s588_s23 = scalar_lea.vmem %s3810_s27, %s2487_s19  ;;  %604 = sbr.rel (%p2428_p1) target bundleno = 195 (0xc3), region = 84 }
  0xb6   : > { %s599_s29 = scalar_lea.vmem %s3811_s28, %s3397_s7  ;;  %s3420_s15 = scalar_lea.vmem %s3812_s3, %s2489_s9 }
  0xb7   : > { %s3813_s4 = sld [smem:[#allocation23_spill]] (!%p2428_p1) }
  0xbd   : > { %v637_v0 = vld [vmem:[%s3813_s4] sm:$0xff]  ;;  %v639_v1 = vld [vmem:[%s3813_s4 + $0x8] sm:$0xff]  ;;  %v641_v2 = vld [vmem:[%s3813_s4 + $0x10] sm:$0xff] }
  0xbe   : > { %638 = vst [vmem:[#allocation2] sm:$0xff] %v637_v0  ;;  %640 = vst [vmem:[#allocation2 + $0x8] sm:$0xff] %v639_v1  ;;  %v643_v3 = vld [vmem:[%s3813_s4 + $0x18] sm:$0xff] }
  0xbf   : > { %642 = vst [vmem:[#allocation2 + $0x10] sm:$0xff] %v641_v2  ;;  %644 = vst [vmem:[#allocation2 + $0x18] sm:$0xff] %v643_v3 }
  0xc0   : > { %652 = vsyncadd [#allocation3], 512 }
  0xc1   : > { %3050 = dma.done.wait [#allocation3], 512 }
  0xc2   : > { %3051 = vsyncadd [#allocation3], 4294966784 }
  0xc3 PF: > { %v2780_v4 = vld [vmem:[%s588_s23] sm:$0xff]   ;;  %v2781_v5 = vld [vmem:[%s588_s23 + $0x8] sm:$0xff]   ;;  %vm662_vm0 = vcmask 261120   ;;  %s3814_s23 = scalar_lea.vmem [#allocation7], %s3382_s22  ;;  %vm3080_vm1 = vmmov 0   ;;  %vm936_vm2 = vcmask 130048  }
  0xc4   : > { %2556 = vmatprep.subr.bf16.mxu1 %v2780_v4  ;;  %v2782_v6 = vld [vmem:[%s3407_s26] sm:$0xff]   ;;  %v2783_v14 = vld [vmem:[%s3407_s26 + $0x8] sm:$0xff]   ;;  %s3815_s26 = smov %s3814_s23  ;;  %vm1173_vm3 = vcmask 1043456   ;;  %vm1121_vm4 = vcmask 64512   ;;  %s3081_s9 = smov 112   ;;  %vm2120_vm5 = vcmask 523264  }
  0xc5   : > { %2557 = vmatpush3.bf16.msra.mxu1 %v2780_v4  ;;  %v3437_v7 = vld [vmem:[#allocation2] sm:$0xff]  ;;  %v3439_v8 = vld [vmem:[#allocation2 + $0x8] sm:$0xff]  ;;  %2548 = vmatprep.subr.bf16.mxu0 %v2782_v6  ;;  %v3079_v4 = vmov 0.0   ;;  %s3816_s11 = scalar_lea.vmem [#allocation9], %s3382_s22  ;;  %s3082_s13 = smov 16  }
  0xc6   : > { %v3441_v9 = vld [vmem:[#allocation2 + $0x10] sm:$0xff]  ;;  %2558 = vmatprep.subr.bf16.mxu1 %v2781_v5  ;;  %v3443_v10 = vld [vmem:[#allocation2 + $0x18] sm:$0xff]  ;;  %v663_v11 = vsel %vm662_vm0, %v3437_v7, 0.0  ;;  %2549 = vmatpush3.bf16.msra.mxu0 %v2782_v6  ;;  %v664_v12 = vsel %vm662_vm0, %v3439_v8, 0.0  ;;  %v2429_v51 = vld [vmem:[%s3374_s24] ss:$0 sm:$0xff]  ;;  %s3817_s28 = smov %s3816_s11 }
  0xc7   : > { %v666_v13 = vsel %vm662_vm0, %v3441_v9, 0.0  ;;  %v665_v15 = vadd.f32 %v664_v12, %v663_v11  ;;  %v668_v16 = vsel %vm662_vm0, %v3443_v10, 0.0  ;;  %2550 = vmatprep.subr.bf16.mxu0 %v2783_v14  ;;  %v2784_v17 = vld [vmem:[%s3814_s23] sm:$0xff]   ;;  %v2430_v56 = vld [vmem:[%s3374_s24 + $0x1] ss:$0 sm:$0xff]  ;;  %s3818_s17 = scalar_lea.vmem [#allocation10], %s3382_s22 }
  0xc8   : > { %v2785_v3 = vld [vmem:[%s3815_s26 + $0x8] sm:$0xff]   ;;  %s3819_s12 = smov %s3818_s17  ;;  %p2478_p4 = scmp.ne.s32.totalorder %s3165_s21, 1 }
  0xc9   : > { %2559 = vmatpush3.bf16.msra.mxu1 %v2781_v5  ;;  %v667_v18 = vadd.f32 %v666_v13, %v665_v15 }
  0xca   : > { %2551 = vmatpush3.bf16.msra.mxu0 %v2783_v14  ;;  %2572 = vmatprep.subr.bf16.mxu1 %v3079_v4 }
  0xcb   : > { %v669_v19 = vadd.f32 %v668_v16, %v667_v18  ;;  %2564 = vmatprep.subr.bf16.mxu0 %v2784_v17 }
  0xcd   : > { %v670_v20 = vrot.slane %v669_v19, 4 }
  0xcf   : > { %v671_v21 = vadd.f32 %v670_v20, %v669_v19 }
  0xd1   : > { %v672_v22 = vrot.slane %v671_v21, 2 }
  0xd3   : > { %v673_v23 = vadd.f32 %v672_v22, %v671_v21 }
  0xd5   : > { %v674_v24 = vrot.slane %v673_v23, 1 }
  0xd7   : > { %v675_v25 = vadd.f32 %v674_v24, %v673_v23 }
  0xd9   : > { %v676_v26 = vmul.f32 0.03125, %v675_v25 }
  0xdb   : > { %v677_v27 = vsub.f32 %v3437_v7, %v676_v26  ;;  %v678_v28 = vsub.f32 %v3439_v8, %v676_v26  ;;  %v679_v29 = vsub.f32 %v3441_v9, %v676_v26  ;;  %v680_v30 = vsub.f32 %v3443_v10, %v676_v26 }
  0xdd   : > { %v681_v31 = vmul.f32 %v677_v27, %v677_v27  ;;  %v682_v32 = vmul.f32 %v678_v28, %v678_v28  ;;  %v683_v33 = vmul.f32 %v679_v29, %v679_v29  ;;  %v684_v34 = vmul.f32 %v680_v30, %v680_v30 }
  0xdf   : > { %v685_v35 = vsel %vm662_vm0, %v681_v31, 0.0  ;;  %v686_v36 = vsel %vm662_vm0, %v682_v32, 0.0  ;;  %v688_v37 = vsel %vm662_vm0, %v683_v33, 0.0  ;;  %v690_v39 = vsel %vm662_vm0, %v684_v34, 0.0 }
  0xe0   : > { %v687_v38 = vadd.f32 %v686_v36, %v685_v35 }
  0xe2   : > { %v689_v40 = vadd.f32 %v688_v37, %v687_v38 }
  0xe4   : > { %v691_v41 = vadd.f32 %v690_v39, %v689_v40 }
  0xe6   : > { %v692_v42 = vrot.slane %v691_v41, 4 }
  0xe8   : > { %v693_v43 = vadd.f32 %v692_v42, %v691_v41 }
  0xea   : > { %v694_v44 = vrot.slane %v693_v43, 2 }
  0xec   : > { %v695_v45 = vadd.f32 %v694_v44, %v693_v43 }
  0xee   : > { %v696_v46 = vrot.slane %v695_v45, 1 }
  0xf0   : > { %v697_v47 = vadd.f32 %v696_v46, %v695_v45 }
  0xf2   : > { %v698_v48 = vmul.f32 0.03125, %v697_v47 }
  0xf4   : > { %v699_v49 = vadd.f32 1e-05, %v698_v48 }
  0xf6   : > { %2794 = vrsqrt.f32 %v699_v49 }
 0x100   : > { %v2795_v50 = vpop.eup %2794 }
 0x101   : > { %v701_v52 = vmul.f32 %v2795_v50, %v677_v27  ;;  %v702_v53 = vmul.f32 %v2795_v50, %v678_v28  ;;  %v703_v54 = vmul.f32 %v2795_v50, %v679_v29  ;;  %v704_v55 = vmul.f32 %v2795_v50, %v680_v30 }
 0x103   : > { %v709_v57 = vmul.f32 %v2429_v51, %v701_v52  ;;  %v710_v58 = vmul.f32 %v2429_v51, %v702_v53  ;;  %v711_v59 = vmul.f32 %v2429_v51, %v703_v54  ;;  %v712_v60 = vmul.f32 %v2429_v51, %v704_v55 }
 0x105   : > { %v717_v61 = vadd.f32 %v2430_v56, %v709_v57  ;;  %v718_v62 = vadd.f32 %v2430_v56, %v710_v58  ;;  %v719_v63 = vadd.f32 %v2430_v56, %v711_v59  ;;  %v720_v0 = vadd.f32 %v2430_v56, %v712_v60 }
 0x107   : > { %v721_v1 = vpack.c.bf16 %v718_v62, %v717_v61  ;;  %v722_v2 = vpack.c.bf16 %v720_v0, %v719_v63 }
 0x109   : > { %2560 = vmatprep.mubr.msk.bf16.mxu1 %vm662_vm0, %v721_v1  ;;  %2552 = vmatprep.mubr.msk.bf16.mxu0 %vm662_vm0, %v721_v1 }
 0x10a   : > { %2561 = vmatmul.mubr.msk.bf16.vlgmr.msra.gmra.mrb[0].mxu1 %vm662_vm0, %v722_v2  ;;  %2553 = vmatmul.mubr.msk.bf16.vlgmr.msra.gmra.mrb[0].mxu0 %vm662_vm0, %v722_v2 }
 0x10b   : > { %2565 = vmatpush3.bf16.msra.mxu0 %v2784_v17  ;;  %2568 = vmatprep.mubr.msk.bf16.mxu0 %vm662_vm0, %v721_v1 }
 0x10c   : > { %2566 = vmatprep.subr.bf16.mxu0 %v2785_v3  ;;  %2574 = vmatprep.mubr.msk.bf16.mxu1 %vm3080_vm1, %v3079_v4 }
 0x10f   : > { %2567 = vmatpush3.bf16.msra.mxu0 %v2785_v3 }
 0x110   : > { %2578 = vmatprep.subr.bf16.mxu0 %v3079_v4 }
 0x112   : > { %2569 = vmatmul.mubr.msk.bf16.vlgmr.msra.gmra.mrb[4].mxu0 %vm662_vm0, %v722_v2 }
 0x113   : > { %2580 = vmatprep.mubr.msk.bf16.mxu0 %vm3080_vm1, %v3079_v4 }
 0x1dd   : > { %v2562_v5 = vpop.f32.mrb[0].mxu1  ;;  %v2554_v6 = vpop.f32.mrb[0].mxu0 }
 0x1de   : > { %v844_v11 = vpop.f32.mrb[1].mxu1  ;;  %v779_v12 = vpop.f32.mrb[1].mxu0  ;;  %v3489_v21 = vpack.c.bf16 %v2562_v5, %v2562_v5  ;;  %v3520_v33 = vpack.c.bf16 %v2554_v6, %v2554_v6 }
 0x1df   : > { %v3480_v13 = vpack.c.bf16 %v844_v11, %v844_v11  ;;  %v2563_v14 = vpop.f32.mrb[2].mxu1  ;;  %v2555_v15 = vpop.f32.mrb[2].mxu0  ;;  %v3491_v22 = vpack.c.bf16 %v779_v12, %v779_v12 }
 0x1e0   : > { %v847_v16 = vpop.f32.mrb[3].mxu1  ;;  %v782_v17 = vpop.f32.mrb[3].mxu0  ;;  %v3496_v25 = vpack.c.bf16 %v2563_v14, %v2563_v14  ;;  %v1033_v28 = vsel %vm936_vm2, %v3489_v21, 0  ;;  %v3524_v35 = vpack.c.bf16 %v2555_v15, %v2555_v15 }
 0x1e1   : > { %v941_v18 = vsel %vm936_vm2, %v3480_v13, 0  ;;  %v3484_v19 = vpack.c.bf16 %v847_v16, %v847_v16  ;;  %v3502_v29 = vpack.c.bf16 %v782_v17, %v782_v17 }
 0x1e2   : > { %2573 = vmatpush3.bf16.xpose.msra.mxu1 %v941_v18  ;;  %v1079_v30 = vsel %vm936_vm2, %v3496_v25, 0 }
 0x1e3   : > { %v987_v20 = vsel %vm936_vm2, %v3484_v19, 0  ;;  %2584 = vmatprep.subr.bf16.mxu1 %v3079_v4 }
 0x1e4   : > { %2579 = vmatpush3.bf16.xpose.msra.mxu0 %v987_v20 }
 0x1e5   : > { %2590 = vmatprep.subr.bf16.mxu0 %v3079_v4  ;;  %v3494_v23 = vpop.f32.mrb[4].mxu0 }
 0x1e6   : > { %v909_v24 = vpop.f32.mrb[5].mxu0 }
 0x1e7   : > { %v3498_v26 = vpop.f32.mrb[6].mxu0  ;;  %v3512_v31 = vpack.c.bf16 %v909_v24, %v909_v24 }
 0x1e8   : > { %v912_v27 = vpop.f32.mrb[7].mxu0 }
 0x1e9   : > { %2575 = vmatmul.mubr.msk.bf16.vlgmr.msra.gmra.mrb[4].mxu1 %vm936_vm2, %v3491_v22  ;;  %v3517_v32 = vpack.c.bf16 %v912_v27, %v912_v27  ;;  %v1175_v34 = vsel %vm1173_vm3, %v3512_v31, 0 }
 0x1ea   : > { %2585 = vmatpush3.bf16.xpose.msra.mxu1 %v1033_v28  ;;  %2586 = vmatprep.mubr.msk.bf16.mxu1 %vm3080_vm1, %v3079_v4 }
 0x1eb   : > { %2581 = vmatmul.mubr.msk.bf16.vlgmr.msra.gmra.mrb[8].mxu0 %vm936_vm2, %v3502_v29  ;;  %2596 = vmatprep.subr.bf16.mxu1 %v3079_v4  ;;  %v1221_v36 = vsel %vm1173_vm3, %v3517_v32, 0 }
 0x1ec   : > { %2591 = vmatpush3.bf16.xpose.msra.mxu0 %v1079_v30  ;;  %2592 = vmatprep.mubr.msk.bf16.mxu0 %vm3080_vm1, %v3079_v4 }
 0x1ed   : > { %2602 = vmatprep.subr.bf16.mxu0 %v3079_v4 }
 0x1f1   : > { %2587 = vmatmul.mubr.msk.bf16.vlgmr.msra.gmra.mrb[8].mxu1 %vm936_vm2, %v3520_v33 }
 0x1f2   : > { %2597 = vmatpush3.bf16.msra.mxu1 %v1175_v34  ;;  %2598 = vmatprep.mubr.msk.bf16.mxu1 %vm3080_vm1, %v3079_v4 }
 0x1f3   : > { %2593 = vmatmul.mubr.msk.bf16.vlgmr.msra.gmra.mrb[12].mxu0 %vm936_vm2, %v3524_v35  ;;  %2608 = vmatprep.subr.bf16.mxu1 %v3079_v4 }
 0x1f4   : > { %2603 = vmatpush3.bf16.msra.mxu0 %v1221_v36  ;;  %2604 = vmatprep.mubr.msk.bf16.mxu0 %vm3080_vm1, %v3079_v4 }
 0x1f5   : > { %2614 = vmatprep.subr.bf16.mxu0 %v3079_v4 }
 0x2bc   : > { %v977_v37 = vpop.f32.mrb[4].mxu1 }
 0x2bd   : > { %v2576_v38 = vpop.f32.mrb[5].mxu1  ;;  %v1122_v39 = vsel %vm1121_vm4, %v977_v37, -inf }
 0x2be   : > { %1123 = vmax.xlane.f32.xlu0 %v1122_v39  ;;  %v980_v40 = vpop.f32.mrb[6].mxu1  ;;  %v1023_v41 = vpop.f32.mrb[8].mxu0 }
 0x2bf   : > { %v2577_v42 = vpop.f32.mrb[7].mxu1  ;;  %v2582_v43 = vpop.f32.mrb[9].mxu0  ;;  %v1125_v46 = vsel %vm1121_vm4, %v1023_v41, -inf }
 0x2c0   : > { %v1026_v44 = vpop.f32.mrb[10].mxu0 }
 0x2c1   : > { %v2583_v45 = vpop.f32.mrb[11].mxu0 }
 0x2c2   : > { %1126 = vmax.xlane.f32.xlu0 %v1125_v46 }
 0x2c4   : > { %v1069_v47 = vpop.f32.mrb[8].mxu1 }
 0x2c5   : > { %v2588_v48 = vpop.f32.mrb[9].mxu1  ;;  %v1128_v49 = vsel %vm1121_vm4, %v1069_v47, -inf }
 0x2c6   : > { %1129 = vmax.xlane.f32.xlu1 %v1128_v49  ;;  %v1072_v50 = vpop.f32.mrb[10].mxu1  ;;  %v1115_v51 = vpop.f32.mrb[12].mxu0 }
 0x2c7   : > { %v2589_v52 = vpop.f32.mrb[11].mxu1  ;;  %v2594_v53 = vpop.f32.mrb[13].mxu0  ;;  %v1131_v56 = vsel %vm1121_vm4, %v1115_v51, -inf }
 0x2c8   : > { %v1118_v54 = vpop.f32.mrb[14].mxu0 }
 0x2c9   : > { %v2595_v55 = vpop.f32.mrb[15].mxu0 }
 0x2ca   : > { %1132 = vmax.xlane.f32.xlu1 %v1131_v56 }
 0x34b   : > { %v1124_v57 = vpop.xlane.xlu0 %1123 }
 0x34c   : > { %v1134_v58 = vsub.f32 %v977_v37, %v1124_v57 }
 0x34e   : > { %v1138_v59 = vmul.f32 1.442695, %v1134_v58 }
 0x34f   : > { %v1127_v60 = vpop.xlane.xlu0 %1126 }
 0x350   : > { %2796 = vpow2.f32 %v1138_v59  ;;  %v1135_v61 = vsub.f32 %v1023_v41, %v1127_v60 }
 0x352   : > { %v1140_v62 = vmul.f32 1.442695, %v1135_v61 }
 0x353   : > { %v1130_v63 = vpop.xlane.xlu1 %1129 }
 0x354   : > { %2798 = vpow2.f32 %v1140_v62  ;;  %v1136_v0 = vsub.f32 %v1069_v47, %v1130_v63 }
 0x356   : > { %v1142_v1 = vmul.f32 1.442695, %v1136_v0 }
 0x357   : > { %v1133_v14 = vpop.xlane.xlu1 %1132 }
 0x358   : > { %2800 = vpow2.f32 %v1142_v1  ;;  %v1137_v15 = vsub.f32 %v1115_v51, %v1133_v14 }
 0x35a   : > { %v2797_v2 = vpop.eup %2796  ;;  %v1144_v16 = vmul.f32 1.442695, %v1137_v15 }
 0x35b   : > { %v1146_v3 = vsel %vm1121_vm4, %v2797_v2, 0.0 }
 0x35c   : > { %1147 = vadd.xlane.f32.xlu0 %v1146_v3  ;;  %2802 = vpow2.f32 %v1144_v16 }
 0x35e   : > { %v2799_v5 = vpop.eup %2798 }
 0x35f   : > { %v1149_v6 = vsel %vm1121_vm4, %v2799_v5, 0.0 }
 0x360   : > { %1150 = vadd.xlane.f32.xlu1 %v1149_v6 }
 0x362   : > { %v2801_v11 = vpop.eup %2800 }
 0x363   : > { %v1152_v12 = vsel %vm1121_vm4, %v2801_v11, 0.0 }
 0x364   : > { %1153 = vadd.xlane.f32.xlu0 %v1152_v12 }
 0x366   : > { %v2803_v17 = vpop.eup %2802 }
 0x367   : > { %v1155_v18 = vsel %vm1121_vm4, %v2803_v17, 0.0 }
 0x371   : > { %1411 = vrot.lane.b32.xlu1 %v3484_v19, %s3081_s9 }
 0x375   : > { %1356 = vrot.lane.b32.xlu1 %v3491_v22, %s3081_s9  ;;  %v3564_v22 = vpack.c.bf16 %v3494_v23, %v3494_v23 }
 0x37a   : > { %1359 = vrot.lane.b32.xlu0 %v3480_v13, %s3081_s9 }
 0x37e   : > { %1463 = vrot.lane.b32.xlu0 %v3489_v21, %s3081_s9 }
 0x382   : > { %1460 = vrot.lane.b32.xlu0 %v3520_v33, %s3081_s9 }
 0x399   : > { %1156 = vadd.xlane.f32.xlu1 %v1155_v18 }
 0x3aa   : > { %1408 = vrot.lane.b32.xlu1 %v3502_v29, %s3081_s9  ;;  %v3570_v29 = vpack.c.bf16 %v3498_v26, %v3498_v26 }
 0x3ac   : > { %v1313_v34 = vsel %vm1173_vm3, %v3570_v29, 0 }
 0x3ae   : > { %1515 = vrot.lane.b32.xlu1 %v3496_v25, %s3081_s9  ;;  %v1267_v25 = vsel %vm1173_vm3, %v3564_v22, 0 }
 0x3b2   : > { %1512 = vrot.lane.b32.xlu1 %v3524_v35, %s3081_s9 }
 0x3e9   : > { %v1148_v13 = vpop.xlane.xlu0 %1147 }
 0x3ea   : > { %2804 = vrcp.f32 %v1148_v13 }
 0x3ed   : > { %v1151_v19 = vpop.xlane.xlu1 %1150 }
 0x3ee   : > { %2806 = vrcp.f32 %v1151_v19 }
 0x3f1   : > { %v1154_v20 = vpop.xlane.xlu0 %1153  ;;  %v1412_v38 = vpop.permute.xlu1 %1411 }
 0x3f2   : > { %2808 = vrcp.f32 %v1154_v20  ;;  %v1417_v48 = vsel %vm936_vm2, %v1412_v38, 0 }
 0x3f4   : > { %v2805_v21 = vpop.eup %2804 }
 0x3f5   : > { %v1162_v24 = vmul.f32 %v2805_v21, %v2797_v2  ;;  %v1360_v26 = vpop.permute.xlu0 %1359  ;;  %v1357_v40 = vpop.permute.xlu1 %1356 }
 0x3f6   : > { %v1365_v37 = vsel %vm936_vm2, %v1360_v26, 0 }
 0x3f7   : > { %v1166_v27 = vpack.c.bf16 %v1162_v24, %v1162_v24 }
 0x3f8   : > { %v2807_v28 = vpop.eup %2806 }
 0x3f9   : > { %v1163_v30 = vmul.f32 %v2807_v28, %v2799_v5  ;;  %2599 = vmatmul.mubr.msk.bf16.vlgmr.msra.gmra.mrb[12].mxu1 %vm1121_vm4, %v1166_v27  ;;  %v1464_v39 = vpop.permute.xlu0 %1463 }
 0x3fa   : > { %2609 = vmatpush3.bf16.msra.mxu1 %v1267_v25  ;;  %2610 = vmatprep.mubr.msk.bf16.mxu1 %vm3080_vm1, %v3079_v4  ;;  %v1469_v41 = vsel %vm936_vm2, %v1464_v39, 0 }
 0x3fb   : > { %v1167_v33 = vpack.c.bf16 %v1163_v30, %v1163_v30  ;;  %2620 = vmatprep.subr.bf16.mxu1 %v3079_v4 }
 0x3fc   : > { %v2809_v23 = vpop.eup %2808 }
 0x3fd   : > { %v1164_v35 = vmul.f32 %v2809_v23, %v2801_v11  ;;  %2605 = vmatmul.mubr.msk.bf16.vlgmr.msra.gmra.mrb[16].mxu0 %vm1121_vm4, %v1167_v33  ;;  %v1461_v42 = vpop.permute.xlu0 %1460 }
 0x3fe   : > { %2615 = vmatpush3.bf16.msra.mxu0 %v1313_v34  ;;  %2616 = vmatprep.mubr.msk.bf16.mxu0 %vm3080_vm1, %v3079_v4 }
 0x3ff   : > { %v1168_v36 = vpack.c.bf16 %v1164_v35, %v1164_v35  ;;  %2626 = vmatprep.subr.bf16.mxu0 %v3079_v4 }
 0x401   : > { %2611 = vmatmul.mubr.msk.bf16.vlgmr.msra.gmra.mrb[16].mxu1 %vm1121_vm4, %v1168_v36 }
 0x402   : > { %2622 = vmatprep.mubr.msk.bf16.mxu1 %vm3080_vm1, %v3079_v4 }
 0x403   : > { %2621 = vmatpush3.bf16.xpose.msra.mxu1 %v1365_v37 }
 0x404   : > { %2632 = vmatprep.subr.bf16.mxu1 %v3079_v4 }
 0x40a   : > { %2623 = vmatmul.mubr.msk.bf16.vlgmr.msra.gmra.mrb[20].mxu1 %vm936_vm2, %v1357_v40 }
 0x40b   : > { %2633 = vmatpush3.bf16.xpose.msra.mxu1 %v1469_v41  ;;  %2634 = vmatprep.mubr.msk.bf16.mxu1 %vm3080_vm1, %v3079_v4 }
 0x40c   : > { %2644 = vmatprep.subr.bf16.mxu1 %v3079_v4 }
 0x412   : > { %2635 = vmatmul.mubr.msk.bf16.vlgmr.msra.gmra.mrb[24].mxu1 %vm936_vm2, %v1461_v42 }
 0x413   : > { %2646 = vmatprep.mubr.msk.bf16.mxu1 %vm3080_vm1, %v3079_v4 }
 0x426   : > { %v1157_v43 = vpop.xlane.xlu1 %1156 }
 0x427   : > { %2810 = vrcp.f32 %v1157_v43 }
 0x42a   : > { %v1409_v47 = vpop.permute.xlu1 %1408 }
 0x42e   : > { %v1516_v49 = vpop.permute.xlu1 %1515 }
 0x42f   : > { %v1521_v50 = vsel %vm936_vm2, %v1516_v49, 0 }
 0x431   : > { %v2811_v44 = vpop.eup %2810 }
 0x432   : > { %v1165_v45 = vmul.f32 %v2811_v44, %v2803_v17  ;;  %v1513_v51 = vpop.permute.xlu1 %1512 }
 0x434   : > { %v1169_v46 = vpack.c.bf16 %v1165_v45, %v1165_v45 }
 0x436   : > { %2617 = vmatmul.mubr.msk.bf16.vlgmr.msra.gmra.mrb[20].mxu0 %vm1121_vm4, %v1169_v46 }
 0x437   : > { %2627 = vmatpush3.bf16.xpose.msra.mxu0 %v1417_v48  ;;  %2628 = vmatprep.mubr.msk.bf16.mxu0 %vm3080_vm1, %v3079_v4 }
 0x438   : > { %2638 = vmatprep.subr.bf16.mxu0 %v3079_v4 }
 0x43e   : > { %2629 = vmatmul.mubr.msk.bf16.vlgmr.msra.gmra.mrb[24].mxu0 %vm936_vm2, %v1409_v47 }
 0x43f   : > { %2639 = vmatpush3.bf16.xpose.msra.mxu0 %v1521_v50  ;;  %2640 = vmatprep.mubr.msk.bf16.mxu0 %vm3080_vm1, %v3079_v4 }
 0x440   : > { %2650 = vmatprep.subr.bf16.mxu0 %v3079_v4 }
 0x446   : > { %2641 = vmatmul.mubr.msk.bf16.vlgmr.msra.gmra.mrb[28].mxu0 %vm936_vm2, %v1513_v51 }
 0x447   : > { %2652 = vmatprep.mubr.msk.bf16.mxu0 %vm3080_vm1, %v3079_v4 }
 0x4cc   : > { %v3608_v52 = vpop.f32.mrb[12].mxu1 }
 0x4cd   : > { %v2600_v53 = vpop.f32.mrb[13].mxu1 }
 0x4ce   : > { %v1214_v54 = vpop.f32.mrb[14].mxu1 }
 0x4cf   : > { %v2601_v55 = vpop.f32.mrb[15].mxu1 }
 0x4d0   : > { %v3610_v56 = vpop.f32.mrb[16].mxu0 }
 0x4d1   : > { %v2606_v57 = vpop.f32.mrb[17].mxu0 }
 0x4d2   : > { %v1260_v58 = vpop.f32.mrb[18].mxu0 }
 0x4d3   : > { %v2607_v59 = vpop.f32.mrb[19].mxu0 }
 0x4d4   : > { %v3612_v60 = vpop.f32.mrb[16].mxu1 }
 0x4d5   : > { %v2612_v61 = vpop.f32.mrb[17].mxu1 }
 0x4d6   : > { %v1306_v62 = vpop.f32.mrb[18].mxu1 }
 0x4d7   : > { %v2613_v63 = vpop.f32.mrb[19].mxu1 }
 0x4dd   : > { %v1401_v0 = vpop.f32.mrb[20].mxu1 }
 0x4de   : > { %v2624_v1 = vpop.f32.mrb[21].mxu1  ;;  %v1563_v2 = vsel %vm1121_vm4, %v1401_v0, -inf }
 0x4df   : > { %1564 = vmax.xlane.f32.xlu0 %v1563_v2  ;;  %v1404_v3 = vpop.f32.mrb[22].mxu1 }
 0x4e0   : > { %v2625_v5 = vpop.f32.mrb[23].mxu1 }
 0x4e5   : > { %v1505_v6 = vpop.f32.mrb[24].mxu1 }
 0x4e6   : > { %v2636_v11 = vpop.f32.mrb[25].mxu1  ;;  %v1569_v12 = vsel %vm1121_vm4, %v1505_v6, -inf }
 0x4e7   : > { %1570 = vmax.xlane.f32.xlu0 %v1569_v12  ;;  %v1508_v14 = vpop.f32.mrb[26].mxu1 }
 0x4e8   : > { %v2637_v15 = vpop.f32.mrb[27].mxu1 }
 0x509   : > { %v3616_v16 = vpop.f32.mrb[20].mxu0 }
 0x50a   : > { %v2618_v17 = vpop.f32.mrb[21].mxu0 }
 0x50b   : > { %v1352_v18 = vpop.f32.mrb[22].mxu0 }
 0x50c   : > { %v2619_v13 = vpop.f32.mrb[23].mxu0 }
 0x511   : > { %v1453_v19 = vpop.f32.mrb[24].mxu0 }
 0x512   : > { %v2630_v20 = vpop.f32.mrb[25].mxu0  ;;  %v1566_v21 = vsel %vm1121_vm4, %v1453_v19, -inf }
 0x513   : > { %1567 = vmax.xlane.f32.xlu1 %v1566_v21  ;;  %v1456_v24 = vpop.f32.mrb[26].mxu0 }
 0x514   : > { %v2631_v27 = vpop.f32.mrb[27].mxu0  ;;  %v2786_v24 = vld [vmem:[%s3816_s11] sm:$0xff]  }
 0x519   : > { %v1557_v28 = vpop.f32.mrb[28].mxu0 }
 0x51a   : > { %v2642_v25 = vpop.f32.mrb[29].mxu0  ;;  %v1572_v30 = vsel %vm1121_vm4, %v1557_v28, -inf }
 0x51b   : > { %1573 = vmax.xlane.f32.xlu0 %v1572_v30  ;;  %v1560_v33 = vpop.f32.mrb[30].mxu0 }
 0x51c   : > { %v2643_v23 = vpop.f32.mrb[31].mxu0 }
 0x56c   : > { %v1565_v34 = vpop.xlane.xlu0 %1564 }
 0x56d   : > { %v1575_v35 = vsub.f32 %v1401_v0, %v1565_v34 }
 0x56f   : > { %v1579_v26 = vmul.f32 1.442695, %v1575_v35 }
 0x571   : > { %2812 = vpow2.f32 %v1579_v26  ;;  %v2787_v26 = vld [vmem:[%s3817_s28 + $0x8] sm:$0xff]  }
 0x574   : > { %v1571_v36 = vpop.xlane.xlu0 %1570 }
 0x575   : > { %v1577_v37 = vsub.f32 %v1505_v6, %v1571_v36 }
 0x577   : > { %v1583_v38 = vmul.f32 1.442695, %v1577_v37 }
 0x579   : > { %2814 = vpow2.f32 %v1583_v38 }
 0x57b   : > { %v2813_v39 = vpop.eup %2812 }
 0x57c   : > { %v1587_v40 = vsel %vm1121_vm4, %v2813_v39, 0.0 }
 0x57d   : > { %1588 = vadd.xlane.f32.xlu0 %v1587_v40 }
 0x583   : > { %v2815_v41 = vpop.eup %2814 }
 0x584   : > { %v1593_v42 = vsel %vm1121_vm4, %v2815_v41, 0.0 }
 0x585   : > { %1594 = vadd.xlane.f32.xlu0 %v1593_v42 }
 0x59b   : > { %1612 = vrot.lane.b32.xlu0 %v3512_v31, %s3081_s9 }
 0x5a0   : > { %v1568_v43 = vpop.xlane.xlu1 %1567 }
 0x5a1   : > { %v1576_v44 = vsub.f32 %v1453_v19, %v1568_v43 }
 0x5a3   : > { %v1581_v45 = vmul.f32 1.442695, %v1576_v44 }
 0x5a5   : > { %2816 = vpow2.f32 %v1581_v45 }
 0x5a8   : > { %v1574_v48 = vpop.xlane.xlu0 %1573 }
 0x5a9   : > { %v1578_v49 = vsub.f32 %v1557_v28, %v1574_v48 }
 0x5ab   : > { %v1585_v50 = vmul.f32 1.442695, %v1578_v49 }
 0x5ad   : > { %2818 = vpow2.f32 %v1585_v50 }
 0x5af   : > { %v2817_v46 = vpop.eup %2816 }
 0x5b0   : > { %v1590_v47 = vsel %vm1121_vm4, %v2817_v46, 0.0 }
 0x5b1   : > { %1591 = vadd.xlane.f32.xlu1 %v1590_v47 }
 0x5b7   : > { %v2819_v51 = vpop.eup %2818 }
 0x5b8   : > { %v1596_v31 = vsel %vm1121_vm4, %v2819_v51, 0.0 }
 0x5c2   : > { %1661 = vrot.lane.b32.xlu1 %v3517_v32, %s3081_s9 }
 0x5c6   : > { %1710 = vrot.lane.b32.xlu1 %v3564_v22, %s3081_s9 }
 0x5ea   : > { %1597 = vadd.xlane.f32.xlu1 %v1596_v31 }
 0x5fb   : > { %1759 = vrot.lane.b32.xlu1 %v3570_v29, %s3081_s9 }
 0x60a   : > { %v1589_v53 = vpop.xlane.xlu0 %1588 }
 0x60b   : > { %2820 = vrcp.f32 %v1589_v53  ;;  %v2459_v53 = vld [vmem:[%s591_s30] ss:$0 sm:$0xff] }
 0x612   : > { %v1595_v54 = vpop.xlane.xlu0 %1594 }
 0x613   : > { %2822 = vrcp.f32 %v1595_v54 }
 0x615   : > { %v2821_v55 = vpop.eup %2820 }
 0x616   : > { %v1603_v57 = vmul.f32 %v2821_v55, %v2813_v39  ;;  %v1613_v32 = vpop.permute.xlu0 %1612 }
 0x617   : > { %v1618_v58 = vsel %vm1173_vm3, %v1613_v32, 0 }
 0x618   : > { %2645 = vmatpush3.bf16.msra.mxu1 %v1618_v58  ;;  %v1607_v22 = vpack.c.bf16 %v1603_v57, %v1603_v57 }
 0x619   : > { %2656 = vmatprep.subr.bf16.mxu1 %v3079_v4 }
 0x61b   : > { %2647 = vmatmul.mubr.msk.bf16.vlgmr.msra.gmra.mrb[28].mxu1 %vm1121_vm4, %v1607_v22 }
 0x61c   : > { %2658 = vmatprep.mubr.msk.bf16.mxu1 %vm3080_vm1, %v3079_v4 }
 0x61d   : > { %v2823_v29 = vpop.eup %2822 }
 0x61e   : > { %v1605_v63 = vmul.f32 %v2823_v29, %v2815_v41 }
 0x620   : > { %v1609_v3 = vpack.c.bf16 %v1605_v63, %v1605_v63 }
 0x63e   : > { %v1592_v59 = vpop.xlane.xlu1 %1591 }
 0x63f   : > { %2824 = vrcp.f32 %v1592_v59 }
 0x642   : > { %v1662_v61 = vpop.permute.xlu1 %1661 }
 0x643   : > { %v1667_v62 = vsel %vm1173_vm3, %v1662_v61, 0 }
 0x644   : > { %2651 = vmatpush3.bf16.msra.mxu0 %v1667_v62 }
 0x645   : > { %2662 = vmatprep.subr.bf16.mxu0 %v3079_v4 }
 0x646   : > { %v1711_v0 = vpop.permute.xlu1 %1710 }
 0x647   : > { %v1716_v1 = vsel %vm1173_vm3, %v1711_v0, 0 }
 0x648   : > { %2657 = vmatpush3.bf16.msra.mxu1 %v1716_v1 }
 0x649   : > { %v2825_v2 = vpop.eup %2824  ;;  %2668 = vmatprep.subr.bf16.mxu1 %v2786_v24 }
 0x64a   : > { %v1604_v5 = vmul.f32 %v2825_v2, %v2817_v46 }
 0x64b   : > { %2659 = vmatmul.mubr.msk.bf16.vlgmr.msra.gmra.mrb[32].mxu1 %vm1121_vm4, %v1609_v3 }
 0x64c   : > { %v1608_v6 = vpack.c.bf16 %v1604_v5, %v1604_v5  ;;  %2669 = vmatpush3.bf16.msra.mxu1 %v2786_v24 }
 0x64d   : > { %2670 = vmatprep.subr.bf16.mxu1 %v2787_v26 }
 0x64e   : > { %2653 = vmatmul.mubr.msk.bf16.vlgmr.msra.gmra.mrb[32].mxu0 %vm1121_vm4, %v1608_v6 }
 0x64f   : > { %2664 = vmatprep.mubr.msk.bf16.mxu0 %vm3080_vm1, %v3079_v4 }
 0x650   : > { %2671 = vmatpush3.bf16.msra.mxu1 %v2787_v26 }
 0x677   : > { %v1598_v11 = vpop.xlane.xlu1 %1597 }
 0x678   : > { %2826 = vrcp.f32 %v1598_v11 }
 0x67b   : > { %v1760_v12 = vpop.permute.xlu1 %1759 }
 0x67c   : > { %v1765_v14 = vsel %vm1173_vm3, %v1760_v12, 0 }
 0x67d   : > { %2663 = vmatpush3.bf16.msra.mxu0 %v1765_v14 }
 0x682   : > { %v2827_v15 = vpop.eup %2826 }
 0x683   : > { %v1606_v17 = vmul.f32 %v2827_v15, %v2819_v51 }
 0x685   : > { %v1610_v18 = vpack.c.bf16 %v1606_v17, %v1606_v17 }
 0x687   : > { %2665 = vmatmul.mubr.msk.bf16.vlgmr.msra.gmra.mrb[36].mxu0 %vm1121_vm4, %v1610_v18 }
 0x6ee   : > { %v1654_v13 = vpop.f32.mrb[28].mxu1 }
 0x6ef   : > { %v2648_v19 = vpop.f32.mrb[29].mxu1 }
 0x6f0   : > { %v1657_v20 = vpop.f32.mrb[30].mxu1 }
 0x6f1   : > { %v2649_v21 = vpop.f32.mrb[31].mxu1 }
 0x71e   : > { %v1752_v27 = vpop.f32.mrb[32].mxu1 }
 0x71f   : > { %v2660_v4 = vpop.f32.mrb[33].mxu1 }
 0x720   : > { %v1755_v28 = vpop.f32.mrb[34].mxu1 }
 0x721   : > { %v1703_v25 = vpop.f32.mrb[32].mxu0  ;;  %v2661_v30 = vpop.f32.mrb[35].mxu1 }
 0x722   : > { %v2770_v33 = vpack.i.bf16 %v1703_v25, %v1654_v13  ;;  %v2654_v23 = vpop.f32.mrb[33].mxu0 }
 0x723   : > { %v1706_v34 = vpop.f32.mrb[34].mxu0 }
 0x724   : > { %2771 = vrot.lane.b32.xlu0 %v2770_v33, %s3082_s13  ;;  %v2655_v35 = vpop.f32.mrb[35].mxu0 }
 0x75a   : > { %v1801_v36 = vpop.f32.mrb[36].mxu0 }
 0x75b   : > { %v2775_v37 = vpack.i.bf16 %v1801_v36, %v1752_v27  ;;  %v2666_v38 = vpop.f32.mrb[37].mxu0 }
 0x75c   : > { %v1804_v39 = vpop.f32.mrb[38].mxu0 }
 0x75d   : > { %2776 = vrot.lane.b32.xlu1 %v2775_v37, %s3082_s13  ;;  %v2667_v40 = vpop.f32.mrb[39].mxu0 }
 0x796   : > { %v2772_v41 = vpop.permute.xlu0 %2771 }
 0x797   : > { %v2774_v42 = vunpack.i.h.bf16 %v2772_v41  ;;  %v2773_v43 = vunpack.i.l.bf16 %v2772_v41 }
 0x799   : > { %v1824_v44 = vsel %vm936_vm2, %v3610_v56, %v2774_v42  ;;  %v1823_v45 = vsel %vm936_vm2, %v3608_v52, %v2773_v43  ;;  %v2788_v56 = vld [vmem:[%s3818_s17] sm:$0xff]   ;;  %v2464_v42 = vld [vmem:[%s3374_s24 + $0x2] ss:$0 sm:$0xff] }
 0x79a   : > { %v1827_v46 = vpack.c.bf16 %v1824_v44, %v1823_v45  ;;  %2676 = vmatprep.subr.bf16.mxu0 %v2788_v56  ;;  %v2789_v52 = vld [vmem:[%s3819_s12 + $0x8] sm:$0xff]  }
 0x79b   : > { %2677 = vmatpush3.bf16.msra.mxu0 %v2788_v56 }
 0x79c   : > { %2672 = vmatprep.mubr.msk.bf16.mxu1 %vm662_vm0, %v1827_v46  ;;  %2678 = vmatprep.subr.bf16.mxu0 %v2789_v52 }
 0x79f   : > { %2679 = vmatpush3.bf16.msra.mxu0 %v2789_v52 }
 0x7cf   : > { %v2777_v47 = vpop.permute.xlu1 %2776 }
 0x7d0   : > { %v2779_v48 = vunpack.i.h.bf16 %v2777_v47  ;;  %v2778_v49 = vunpack.i.l.bf16 %v2777_v47  ;;  %v2465_v47 = vld [vmem:[%s3374_s24 + $0x3] ss:$0 sm:$0xff] }
 0x7d2   : > { %v1826_v50 = vsel %vm936_vm2, %v3616_v16, %v2779_v48  ;;  %v1825_v51 = vsel %vm936_vm2, %v3612_v60, %v2778_v49 }
 0x7d3   : > { %v1828_v31 = vpack.c.bf16 %v1826_v50, %v1825_v51 }
 0x7d5   : > { %2673 = vmatmul.mubr.msk.bf16.vlgmr.msra.gmra.mrb[36].mxu1 %vm662_vm0, %v1828_v31 }
 0x8a8   : > { %v2674_v16 = vpop.f32.mrb[36].mxu1 }
 0x8a9   : > { %v1892_v54 = vpop.f32.mrb[37].mxu1  ;;  %v1901_v55 = vadd.f32 %v2674_v16, %v2459_v53 }
 0x8aa   : > { %v1893_v60 = vadd.f32 %v2459_v53, %v1892_v54  ;;  %v2675_v57 = vpop.f32.mrb[38].mxu1 }
 0x8ab   : > { %v1895_v32 = vpop.f32.mrb[39].mxu1  ;;  %v1904_v22 = vadd.f32 %v2675_v57, %v2459_v53  ;;  %v3673_v29 = vadd.f32 %v1901_v55, %v3441_v9  ;;  %v2790_v55 = vld [vmem:[%s3420_s15] sm:$0xff]   ;;  %v2792_v57 = vld [vmem:[%s3420_s15 + $0x10] sm:$0xff]  }
 0x8ac   : > { %v3670_v58 = vadd.f32 %v1893_v60, %v3437_v7  ;;  %v1896_v59 = vadd.f32 %v2459_v53, %v1895_v32  ;;  %2684 = vmatprep.subr.bf16.mxu1 %v2790_v55  ;;  %v2791_v60 = vld [vmem:[%s3420_s15 + $0x8] sm:$0xff]   ;;  %v2793_v32 = vld [vmem:[%s3420_s15 + $0x18] sm:$0xff]  }
 0x8ad   : > { %v3681_v63 = vadd.f32 %v1904_v22, %v3443_v10  ;;  %v1916_v7 = vsel %vm662_vm0, %v3673_v29, 0.0  ;;  %2685 = vmatpush3.bf16.msra.mxu1 %v2790_v55  ;;  %v2466_v22 = vld [vmem:[%s507_s0] ss:$0 sm:$0xff] }
 0x8ae   : > { %v3676_v61 = vadd.f32 %v1896_v59, %v3439_v8  ;;  %v1913_v62 = vsel %vm662_vm0, %v3670_v58, 0.0  ;;  %2686 = vmatprep.subr.bf16.mxu1 %v2791_v60 }
 0x8af   : > { %v1918_v9 = vsel %vm662_vm0, %v3681_v63, 0.0 }
 0x8b0   : > { %v1914_v0 = vsel %vm662_vm0, %v3676_v61, 0.0 }
 0x8b1   : > { %v1915_v1 = vadd.f32 %v1914_v0, %v1913_v62  ;;  %2687 = vmatpush3.bf16.msra.mxu1 %v2791_v60 }
 0x8b2   : > { %2688 = vmatprep.subr.bf16.mxu1 %v2792_v57 }
 0x8b3   : > { %v1917_v2 = vadd.f32 %v1916_v7, %v1915_v1 }
 0x8b5   : > { %v1919_v3 = vadd.f32 %v1918_v9, %v1917_v2  ;;  %2689 = vmatpush3.bf16.msra.mxu1 %v2792_v57 }
 0x8b6   : > { %2690 = vmatprep.subr.bf16.mxu1 %v2793_v32 }
 0x8b7   : > { %v1920_v8 = vrot.slane %v1919_v3, 4 }
 0x8b9   : > { %v1921_v5 = vadd.f32 %v1920_v8, %v1919_v3  ;;  %2691 = vmatpush3.bf16.msra.mxu1 %v2793_v32 }
 0x8bb   : > { %v1922_v6 = vrot.slane %v1921_v5, 2 }
 0x8bd   : > { %v1923_v11 = vadd.f32 %v1922_v6, %v1921_v5 }
 0x8bf   : > { %v1924_v12 = vrot.slane %v1923_v11, 1 }
 0x8c1   : > { %v1925_v14 = vadd.f32 %v1924_v12, %v1923_v11 }
 0x8c3   : > { %v1926_v10 = vmul.f32 0.03125, %v1925_v14 }
 0x8c5   : > { %v1927_v15 = vsub.f32 %v3670_v58, %v1926_v10  ;;  %v1928_v17 = vsub.f32 %v3676_v61, %v1926_v10  ;;  %v1929_v18 = vsub.f32 %v3673_v29, %v1926_v10  ;;  %v1930_v13 = vsub.f32 %v3681_v63, %v1926_v10 }
 0x8c7   : > { %v1931_v19 = vmul.f32 %v1927_v15, %v1927_v15  ;;  %v1932_v20 = vmul.f32 %v1928_v17, %v1928_v17  ;;  %v1933_v21 = vmul.f32 %v1929_v18, %v1929_v18  ;;  %v1934_v24 = vmul.f32 %v1930_v13, %v1930_v13 }
 0x8c9   : > { %v1935_v27 = vsel %vm662_vm0, %v1931_v19, 0.0  ;;  %v1936_v4 = vsel %vm662_vm0, %v1932_v20, 0.0  ;;  %v1938_v25 = vsel %vm662_vm0, %v1933_v21, 0.0  ;;  %v1940_v33 = vsel %vm662_vm0, %v1934_v24, 0.0 }
 0x8ca   : > { %v1937_v28 = vadd.f32 %v1936_v4, %v1935_v27 }
 0x8cc   : > { %v1939_v30 = vadd.f32 %v1938_v25, %v1937_v28 }
 0x8ce   : > { %v1941_v23 = vadd.f32 %v1940_v33, %v1939_v30 }
 0x8d0   : > { %v1942_v34 = vrot.slane %v1941_v23, 4 }
 0x8d2   : > { %v1943_v35 = vadd.f32 %v1942_v34, %v1941_v23 }
 0x8d4   : > { %v1944_v26 = vrot.slane %v1943_v35, 2 }
 0x8d6   : > { %v1945_v36 = vadd.f32 %v1944_v26, %v1943_v35 }
 0x8d8   : > { %v1946_v37 = vrot.slane %v1945_v36, 1 }
 0x8da   : > { %v1947_v38 = vadd.f32 %v1946_v37, %v1945_v36  ;;  %v2471_v37 = vld [vmem:[%s599_s29] ss:$0 sm:$0xff] }
 0x8dc   : > { %v1948_v39 = vmul.f32 0.03125, %v1947_v38 }
 0x8de   : > { %v1949_v40 = vadd.f32 1e-05, %v1948_v39 }
 0x8e0   : > { %2828 = vrsqrt.f32 %v1949_v40 }
 0x8ea   : > { %v2829_v41 = vpop.eup %2828 }
 0x8eb   : > { %v1952_v43 = vmul.f32 %v2829_v41, %v1928_v17  ;;  %v1951_v44 = vmul.f32 %v2829_v41, %v1927_v15  ;;  %v1953_v45 = vmul.f32 %v2829_v41, %v1929_v18  ;;  %v1954_v46 = vmul.f32 %v2829_v41, %v1930_v13 }
 0x8ed   : > { %v1960_v48 = vmul.f32 %v2464_v42, %v1952_v43  ;;  %v1959_v49 = vmul.f32 %v2464_v42, %v1951_v44  ;;  %v1961_v50 = vmul.f32 %v2464_v42, %v1953_v45  ;;  %v1962_v51 = vmul.f32 %v2464_v42, %v1954_v46 }
 0x8ef   : > { %v1967_v31 = vadd.f32 %v2465_v47, %v1959_v49  ;;  %v1968_v56 = vadd.f32 %v2465_v47, %v1960_v48  ;;  %v1969_v52 = vadd.f32 %v2465_v47, %v1961_v50  ;;  %v1970_v53 = vadd.f32 %v2465_v47, %v1962_v51 }
 0x8f1   : > { %v1971_v16 = vpack.c.bf16 %v1968_v56, %v1967_v31  ;;  %v1972_v54 = vpack.c.bf16 %v1970_v53, %v1969_v52 }
 0x8f3   : > { %2680 = vmatprep.mubr.msk.bf16.mxu0 %vm662_vm0, %v1971_v16 }
 0x8f4   : > { %2681 = vmatmul.mubr.msk.bf16.vlgmr.msra.gmra.mrb[40].mxu0 %vm662_vm0, %v1972_v54 }
 0x9c7   : > { %v2682_v59 = vpop.f32.mrb[40].mxu0 }
 0x9c8   : > { %v2045_v62 = vadd.f32 %v2682_v59, %v2466_v22  ;;  %v2036_v0 = vpop.f32.mrb[41].mxu0 }
 0x9c9   : > { %v2037_v1 = vadd.f32 %v2466_v22, %v2036_v0  ;;  %v2683_v7 = vpop.f32.mrb[42].mxu0 }
 0x9ca   : > { %v2053_v2 = vsub.f32 0.0, %v2045_v62  ;;  %v2048_v9 = vadd.f32 %v2683_v7, %v2466_v22  ;;  %v2039_v3 = vpop.f32.mrb[43].mxu0 }
 0x9cb   : > { %v2051_v8 = vsub.f32 0.0, %v2037_v1  ;;  %v2040_v5 = vadd.f32 %v2466_v22, %v2039_v3 }
 0x9cc   : > { %v2059_v6 = vmul.f32 1.442695, %v2053_v2  ;;  %v2054_v11 = vsub.f32 0.0, %v2048_v9 }
 0x9cd   : > { %v2055_v12 = vmul.f32 1.442695, %v2051_v8  ;;  %v2052_v14 = vsub.f32 0.0, %v2040_v5 }
 0x9ce   : > { %2830 = vpow2.f32 %v2059_v6  ;;  %v2061_v10 = vmul.f32 1.442695, %v2054_v11 }
 0x9cf   : > { %2832 = vpow2.f32 %v2055_v12  ;;  %v2057_v15 = vmul.f32 1.442695, %v2052_v14 }
 0x9d0   : > { %2834 = vpow2.f32 %v2061_v10 }
 0x9d1   : > { %2836 = vpow2.f32 %v2057_v15 }
 0x9d8   : > { %v2831_v17 = vpop.eup %2830 }
 0x9d9   : > { %v2833_v18 = vpop.eup %2832  ;;  %v2065_v13 = vadd.f32 1.0, %v2831_v17 }
 0x9da   : > { %v2835_v19 = vpop.eup %2834  ;;  %v2063_v20 = vadd.f32 1.0, %v2833_v18 }
 0x9db   : > { %v2837_v21 = vpop.eup %2836  ;;  %2838 = vrcp.f32 %v2065_v13  ;;  %v2066_v24 = vadd.f32 1.0, %v2835_v19 }
 0x9dc   : > { %2840 = vrcp.f32 %v2063_v20  ;;  %v2064_v27 = vadd.f32 1.0, %v2837_v21 }
 0x9dd   : > { %2842 = vrcp.f32 %v2066_v24 }
 0x9de   : > { %2844 = vrcp.f32 %v2064_v27 }
 0x9e5   : > { %v2839_v4 = vpop.eup %2838 }
 0x9e6   : > { %v2841_v28 = vpop.eup %2840  ;;  %v2077_v33 = vmul.f32 %v2839_v4, %v2045_v62 }
 0x9e7   : > { %v2843_v25 = vpop.eup %2842  ;;  %v2075_v34 = vmul.f32 %v2841_v28, %v2037_v1 }
 0x9e8   : > { %v2845_v30 = vpop.eup %2844  ;;  %v2078_v23 = vmul.f32 %v2843_v25, %v2048_v9 }
 0x9e9   : > { %v2076_v35 = vmul.f32 %v2845_v30, %v2040_v5 }
 0x9ea   : > { %v2080_v26 = vpack.c.bf16 %v2078_v23, %v2077_v33 }
 0x9eb   : > { %v2079_v36 = vpack.c.bf16 %v2076_v35, %v2075_v34 }
 0x9ed   : > { %2692 = vmatprep.mubr.msk.bf16.mxu1 %vm2120_vm5, %v2079_v36 }
 0x9ee   : > { %2693 = vmatmul.mubr.msk.bf16.vlgmr.msra.gmra.mrb[40].mxu1 %vm2120_vm5, %v2080_v26 }
 0xac1   : > { %v2694_v38 = vpop.f32.mrb[40].mxu1 }
 0xac2   : > { %v2170_v39 = vadd.f32 %v2694_v38, %v2471_v37  ;;  %v2161_v40 = vpop.f32.mrb[41].mxu1 }
 0xac3   : > { %v2162_v41 = vadd.f32 %v2471_v37, %v2161_v40  ;;  %v2695_v42 = vpop.f32.mrb[42].mxu1  ;;  %2187 = sbr.rel (%p2478_p4) target bundleno = 2762 (0xaca), region = 122 }
 0xac4   : > { %v2178_v43 = vadd.f32 %v2170_v39, %v3673_v29  ;;  %v2173_v44 = vadd.f32 %v2695_v42, %v2471_v37  ;;  %v2164_v45 = vpop.f32.mrb[43].mxu1 }
 0xac5   : > { %v2176_v46 = vadd.f32 %v2162_v41, %v3670_v58  ;;  %v2165_v47 = vadd.f32 %v2471_v37, %v2164_v45 }
 0xac6   : > { %2182 = vst.msk [vmem:[#allocation2 + $0x10] sm:$0xff] %vm662_vm0, %v2178_v43  ;;  %v2179_v48 = vadd.f32 %v2173_v44, %v3681_v63  ;;  %2190 = vst.msk [vmem:[#allocation13 + $0x10] sm:$0xff] (!%p2478_p4), %vm662_vm0, %v2178_v43 }
 0xac7   : > { %2180 = vst.msk [vmem:[#allocation2] sm:$0xff] %vm662_vm0, %v2176_v46  ;;  %v2177_v49 = vadd.f32 %v2165_v47, %v3676_v61  ;;  %2188 = vst.msk [vmem:[#allocation13] sm:$0xff] (!%p2478_p4), %vm662_vm0, %v2176_v46 }
 0xac8   : > { %2183 = vst.msk [vmem:[#allocation2 + $0x18] sm:$0xff] %vm662_vm0, %v2179_v48  ;;  %2191 = vst.msk [vmem:[#allocation13 + $0x18] sm:$0xff] (!%p2478_p4), %vm662_vm0, %v2179_v48 }
 0xac9   : > { %2181 = vst.msk [vmem:[#allocation2 + $0x8] sm:$0xff] %vm662_vm0, %v2177_v49  ;;  %2189 = vst.msk [vmem:[#allocation13 + $0x8] sm:$0xff] (!%p2478_p4), %vm662_vm0, %v2177_v49 }
 0xaca PF: > { %p2727_p11 = scmp.eq.s32.totalorder %s3165_s21, 1  ;;  %s3083_s15 = smov [#allocation13]  }
 0xacb   : > { %s2198_s7 = sshll.u32 %s3083_s15, 4  ;;  %s2199_s7 = int_to_ptr.vmem [resolvable:$true] %s2198_s7 }
 0xacc   : > { %s2996_s30 = scalar_lea.vmem %s2199_s7, 512  ;;  %p3003_p12 = scmp.lt.s32.totalorder %s2199_s7, %s2199_s7 }
 0xacd   : > { %p2997_p8 = scmp.ne.s32.totalorder %s2199_s7, %s2996_s30  ;;  %p3004_p0 = scmp.lt.s32.totalorder %s2996_s30, %s2996_s30 }
 0xacf   : > { %p2998_p9 = pnand %p2997_p8, %p2727_p11  ;;  %p3005_p2 = por %p3004_p0, %p3003_p12 }
 0xad1   : > { %p2999_p7 = pneg %p2998_p9 }
 0xad3   : > { %p3006_p5 = pnand %p3005_p2, %p2999_p7 }
 0xad5   : > { %3009 = shalt.err (!%p3006_p5)
}
 0xad6   : > { %s3821_s19 = sld [smem:[#allocation29_spill]] }
 0xadc   : > { %s3822_s27 = smov %s3821_s19  ;;  %s3010_s20 = scalar_lea.hbm %s3821_s19, 512 }
 0xadd   : > { %p3011_p6 = scmp.ne.s32.totalorder %s3822_s27, %s3010_s20  ;;  %p3016_p13 = scmp.lt.u32.totalorder %s3010_s20, %s3822_s27 }
 0xadf   : > { %p3012_p3 = pnand %p3011_p6, %p2727_p11 }
 0xae1   : > { %p3013_p10 = pneg %p3012_p3 }
 0xae3   : > { %p3018_p1 = pnand %p3016_p13, %p3013_p10 }
 0xae5   : > { %3021 = shalt.err (!%p3018_p1)
}
 0xae6   : > { %s3084_s9 = smov 128   ;;  %s3085_s11 = smov 8  }
 0xae7   : > { %2707 = dma.vmem_to_hbm [thread:$0]  (%p2727_p11), %s2199_s7, 512, %s3822_s27, [#allocation6], %s3084_s9, %s3084_s9, %s3085_s11  }
 0xae8   : > { %3053 = dma.done.wait (%p2727_p11), [#allocation6], 512  }
 0xae9   : > { %3055 = vsyncadd (%p2727_p11), [#allocation6], 4294966784 }
 0xaea PF: > { %s3823_s20 = sld [smem:[#allocation21_spill]]  ;;  %s3824_s12 = sld [smem:[#allocation20_spill]] }
 0xaeb   : > { %s3825_s19 = sld [smem:[#allocation22_spill]]  ;;  %s3826_s17 = smov %s3062_s18 }
 0xaf0   : > { %p28_p4 = scmp.ge.s32.totalorder %s3823_s20, 4   ;;  %s3827_s18 = smov %s3824_s12 }
 0xaf2   :  { %30 = sbr.rel (!%p28_p4) target bundleno = 16 (0x10), region = 210 }
 0xaf9   :  { %2214 = vsyncpa [#allocation5], 1 }
 0xafa   :  { %2216 = vsyncpa [#allocation5 + $0x1], 1 }
 0xafb   :  { %2217 = vsyncpa [#allocation8], 1 }
 0xafc   :  { %2219 = vsyncpa [#allocation8 + $0x1], 1 }
 0xafd   :  { %2220 = vsyncpa [#allocation11], 1 }
 0xafe   :  { %2222 = vsyncpa [#allocation11 + $0x1], 1 }
 0xaff   :  { %2223 = vsyncpa [#allocation6], 1 }
 0xb00   :  { %2225 = vsyncpa [#allocation6 + $0x1], 1 }
 0xb01   :  { %2226 = vsyncmov [#allocation3] }
 0xb04   :  { %s2227_s21 = vpop.sfrf %2226 }
 0xb05   :  { %p2483_p11 = scmp.ne.s32.totalorder %s2227_s21, 0 }
 0xb07   :  { %2231 = shalt.err (%p2483_p11)  }

</bundles_post_ra>
